<compile_context>
chip_gen: v7x
topology: tpu7x:2x2x1
jax: 0.10.0
libtpu: 0.0.40
codegen_flags: <defaults>
</compile_context>

<pallas_src>
import functools

import jax
import jax.numpy as jnp
from jax import lax
from jax.experimental import pallas as pl
from jax.experimental.pallas import tpu as pltpu


def _round_up(x, m):
    return (x + m - 1) // m * m


def _pick_strip_rows(H, W):
    """Largest row-strip ts with ts | H, sublane-aligned ts*W, aiming for a
    ~128-row M dimension for the pointwise MXU matmul."""
    target = max(1, min(H, 128 // max(W, 1)))
    for ts in range(target, 0, -1):
        if H % ts == 0 and (ts * W) % 8 == 0:
            return ts
    return H  # single full-image strip (block dim == full array dim is legal)


def _mn_block_kernel(x_ref, dw_ref, b1_ref, pw_ref, b2_ref, o_ref, *, ts, w):
    # x_ref : (1, H+2, Wp, Cp_in)  zero-padded input, whole image of one batch
    #                              element (block index constant over strips,
    #                              so it is DMA'd once per batch element).
    # dw_ref: (9, Cp_in)           depthwise 3x3 taps, pre-scaled by BN1 scale,
    #                              row k = kh*3 + kw.
    # b1_ref: (1, Cp_in)           folded BN1 bias.
    # pw_ref: (Cp_in, Cp_out)      pointwise weights pre-scaled by BN2 scale.
    # b2_ref: (1, Cp_out)          folded BN2 bias.
    # o_ref : (1, ts*w, Cp_out)    lane-dense 2-D output tile for this strip.
    cin_p = x_ref.shape[3]
    wp = x_ref.shape[2]

    strip = pl.program_id(1)
    row0 = pl.multiple_of(strip * ts, ts)      # first padded input row of strip

    # (ts+2, Wp, Cp_in) halo'd row strip; rows live on the leading untiled axis.
    x = x_ref[0, pl.ds(row0, ts + 2), :, :].astype(jnp.float32)

    # Hoisted, broadcast-ready parameter loads (once per grid step).
    taps = dw_ref[...].astype(jnp.float32).reshape(9, 1, 1, cin_p)
    b1 = b1_ref[...].astype(jnp.float32).reshape(1, 1, cin_p)

    # --- 3x3 depthwise conv (VPU multiply-adds). kh shift = free row offset;
    # kw shift = XLU sublane roll (no per-tap relayout).  Padded width means
    # the kept columns [0, w) never see wrapped data. BN1 scale is already
    # folded into the taps, so only the bias add remains. ---
    acc = None
    for kw in range(3):
        xs = x if kw == 0 else pltpu.roll(x, shift=wp - kw, axis=1)
        xs = xs[:, :w, :]                                       # (ts+2, w, Cp_in)
        for kh in range(3):
            term = xs[kh:kh + ts] * taps[kh * 3 + kw]           # (ts, w, Cp_in)
            acc = term if acc is None else acc + term

    # --- BN1 bias + ReLU ---
    h1 = jnp.maximum(acc + b1, 0.0).reshape(ts * w, cin_p)

    # --- 1x1 pointwise conv == (ts*w, Cp_in) x (Cp_in, Cp_out) MXU matmul
    #     (BN2 scale folded into the weight columns) ---
    out = jnp.dot(h1, pw_ref[...].astype(jnp.float32),
                  preferred_element_type=jnp.float32)           # (ts*w, Cp_out)

    # --- BN2 bias + ReLU, dense 2-D store (lane dim = Cp_out) ---
    b2 = b2_ref[...].astype(jnp.float32)
    o_ref[0] = jnp.maximum(out + b2, 0.0).astype(o_ref.dtype)


def mn_block_pallas(x_nchw, dw_w, pw_w, bn1, bn2, eps=1e-5):
    """x_nchw: (N, Cin, H, W); dw_w: (Cin, 1, 3, 3); pw_w: (Cout, Cin, 1, 1);
    bn1/bn2: dicts with gamma, beta, running_mean, running_var (eval-mode)."""
    N, Cin, H, W = x_nchw.shape
    Cout = pw_w.shape[0]

    cin_p = _round_up(Cin, 128)        # lane-dense channel padding
    cout_p = _round_up(Cout, 128)
    wp = _round_up(W + 2, 8)           # halo + sublane-aligned width
    ts = _pick_strip_rows(H, W)        # row-strip size
    n_strips = H // ts

    # Glue: layout + halo + channel padding + BN folding into weights/biases.
    # All of this acts on tiny weight arrays or is pure layout plumbing that
    # would not exist in an NHWC end-to-end network.
    def bn_fold(bn):
        scale = bn["gamma"] / jnp.sqrt(bn["running_var"] + eps)
        bias = bn["beta"] - bn["running_mean"] * scale
        return scale, bias

    s1, b1 = bn_fold(bn1)
    s2, b2 = bn_fold(bn2)

    x_nhwc = jnp.transpose(x_nchw, (0, 2, 3, 1))
    x_pad = jnp.pad(x_nhwc,
                    ((0, 0), (1, 1), (1, wp - (W + 1)), (0, cin_p - Cin)))

    # Depthwise taps, pre-scaled by BN1 scale: (9, Cin) -> padded (9, cin_p).
    dw_taps = jnp.transpose(dw_w[:, 0, :, :], (1, 2, 0)).reshape(9, Cin)
    dw_taps = jnp.pad(dw_taps * s1[None, :], ((0, 0), (0, cin_p - Cin)))

    # Pointwise matrix (Cin, Cout), columns pre-scaled by BN2 scale, padded.
    pw_mat = jnp.transpose(pw_w[:, :, 0, 0], (1, 0)) * s2[None, :]
    pw_mat = jnp.pad(pw_mat, ((0, cin_p - Cin), (0, cout_p - Cout)))

    b1p = jnp.pad(b1, (0, cin_p - Cin)).reshape(1, cin_p)
    b2p = jnp.pad(b2, (0, cout_p - Cout)).reshape(1, cout_p)

    flops = N * H * W * (9 * 2 * cin_p + 2 * cin_p * cout_p)
    bytes_accessed = 4 * (x_pad.size + N * H * W * cout_p + dw_taps.size
                          + pw_mat.size + cin_p + cout_p)

    out_flat = pl.pallas_call(
        functools.partial(_mn_block_kernel, ts=ts, w=W),
        out_shape=jax.ShapeDtypeStruct((N, H * W, cout_p), x_nchw.dtype),
        grid_spec=pltpu.PrefetchScalarGridSpec(
            num_scalar_prefetch=0,
            grid=(N, n_strips),
            in_specs=[
                # Whole padded image of batch n; block index is constant across
                # the strip axis, so it is DMA'd once per batch element.
                pl.BlockSpec((1, H + 2, wp, cin_p), lambda n, s: (n, 0, 0, 0)),
                pl.BlockSpec((9, cin_p), lambda n, s: (0, 0)),
                pl.BlockSpec((1, cin_p), lambda n, s: (0, 0)),
                pl.BlockSpec((cin_p, cout_p), lambda n, s: (0, 0)),
                pl.BlockSpec((1, cout_p), lambda n, s: (0, 0)),
            ],
            out_specs=pl.BlockSpec((1, ts * W, cout_p), lambda n, s: (n, s, 0)),
        ),
        compiler_params=pltpu.CompilerParams(
            dimension_semantics=("parallel", "parallel"),
            vmem_limit_bytes=32 * 1024 * 1024),
        cost_estimate=pl.CostEstimate(flops=flops, transcendentals=0,
                                      bytes_accessed=bytes_accessed),
    )(x_pad, dw_taps, b1p, pw_mat, b2p)

    out = out_flat[:, :, :Cout].reshape(N, H, W, Cout)
    return jnp.transpose(out, (0, 3, 1, 2))                     # back to NCHW


def mn_block_reference(x_nchw, dw_w, pw_w, bn1, bn2, eps=1e-5):
    """Pure-JAX reference (NCHW, lax conv) mirroring the PyTorch forward."""
    Cin = x_nchw.shape[1]
    y = lax.conv_general_dilated(
        x_nchw, dw_w, window_strides=(1, 1), padding=((1, 1), (1, 1)),
        feature_group_count=Cin,
        dimension_numbers=("NCHW", "OIHW", "NCHW"))
    s1 = bn1["gamma"] / jnp.sqrt(bn1["running_var"] + eps)
    y = jax.nn.relu(y * s1[None, :, None, None]
                    + (bn1["beta"] - bn1["running_mean"] * s1)[None, :, None, None])
    y = lax.conv_general_dilated(
        y, pw_w, window_strides=(1, 1), padding=((0, 0), (0, 0)),
        dimension_numbers=("NCHW", "OIHW", "NCHW"))
    s2 = bn2["gamma"] / jnp.sqrt(bn2["running_var"] + eps)
    y = jax.nn.relu(y * s2[None, :, None, None]
                    + (bn2["beta"] - bn2["running_mean"] * s2)[None, :, None, None])
    return y


if __name__ == "__main__":
    # small shapes consistent with the module: N=2, Cin=4, Cout=8, 16x16 spatial
    N, Cin, Cout, H, W = 2, 4, 8, 16, 16
    key = jax.random.PRNGKey(0)
    k = jax.random.split(key, 8)

    x = jax.random.normal(k[0], (N, Cin, H, W), jnp.float32)
    dw_w = jax.random.normal(k[1], (Cin, 1, 3, 3), jnp.float32) * 0.3     # conv1 weight
    pw_w = jax.random.normal(k[2], (Cout, Cin, 1, 1), jnp.float32) * 0.3  # conv2 weight
    bn1 = dict(
        gamma=jax.random.uniform(k[3], (Cin,), jnp.float32, 0.5, 1.5),
        beta=jax.random.normal(k[4], (Cin,), jnp.float32) * 0.1,
        running_mean=jax.random.normal(k[5], (Cin,), jnp.float32) * 0.1,
        running_var=jax.random.uniform(k[5], (Cin,), jnp.float32, 0.5, 1.5),
    )
    bn2 = dict(
        gamma=jax.random.uniform(k[6], (Cout,), jnp.float32, 0.5, 1.5),
        beta=jax.random.normal(k[7], (Cout,), jnp.float32) * 0.1,
        running_mean=jax.random.normal(k[7], (Cout,), jnp.float32) * 0.1,
        running_var=jax.random.uniform(k[6], (Cout,), jnp.float32, 0.5, 1.5),
    )

    out = jax.block_until_ready(mn_block_pallas(x, dw_w, pw_w, bn1, bn2))
    ref = jax.block_until_ready(mn_block_reference(x, dw_w, pw_w, bn1, bn2))

    assert out.shape == (N, Cout, H, W), out.shape
    assert jnp.allclose(out, ref, atol=1e-3, rtol=1e-3), float(jnp.abs(out - ref).max())
    print("KERNEL_OK")
</pallas_src>

<mosaic_0001>
module attributes {stable_mosaic.version = 11 : i64} {
  func.func @_mn_block_kernel(%arg0: i32, %arg1: i32, %arg2: memref<1x18x24x128xf32, #tpu.memory_space<vmem>>, %arg3: memref<9x128xf32, #tpu.memory_space<vmem>>, %arg4: memref<1x128xf32, #tpu.memory_space<vmem>>, %arg5: memref<128x128xf32, #tpu.memory_space<vmem>>, %arg6: memref<1x128xf32, #tpu.memory_space<vmem>>, %arg7: memref<1x128x128xf32, #tpu.memory_space<vmem>>) attributes {dimension_semantics = [#tpu.dimension_semantics<parallel>, #tpu.dimension_semantics<parallel>], iteration_bounds = array<i64: 2, 2>, scalar_prefetch = 0 : i64, scratch_operands = 0 : i64, tpu.core_type = #tpu.core_type<tc>, window_params = [{transform_indices = @transform_0, window_bounds = array<i64: 1, 18, 24, 128>}, {pipeline_mode = #tpu.pipeline_mode<synchronous>, transform_indices = @transform_1, window_bounds = array<i64: 9, 128>}, {pipeline_mode = #tpu.pipeline_mode<synchronous>, transform_indices = @transform_2, window_bounds = array<i64: 1, 128>}, {pipeline_mode = #tpu.pipeline_mode<synchronous>, transform_indices = @transform_3, window_bounds = array<i64: 128, 128>}, {pipeline_mode = #tpu.pipeline_mode<synchronous>, transform_indices = @transform_4, window_bounds = array<i64: 1, 128>}, {transform_indices = @transform_5, window_bounds = array<i64: 1, 128, 128>}]} {
    %c8_i32 = arith.constant 8 : i32
    %0 = arith.muli %arg1, %c8_i32 : i32
    %1 = tpu.assume_multiple %0, 8 : i32
    %c0 = arith.constant 0 : index
    %2 = arith.index_cast %1 : i32 to index
    %c0_0 = arith.constant 0 : index
    %c0_1 = arith.constant 0 : index
    %3 = vector.load %arg2[%c0, %2, %c0_0, %c0_1] : memref<1x18x24x128xf32, #tpu.memory_space<vmem>>, vector<1x10x24x128xf32>
    %4 = vector.shape_cast %3 : vector<1x10x24x128xf32> to vector<10x24x128xf32>
    %c0_2 = arith.constant 0 : index
    %c0_3 = arith.constant 0 : index
    %5 = vector.load %arg3[%c0_2, %c0_3] : memref<9x128xf32, #tpu.memory_space<vmem>>, vector<9x128xf32>
    %6 = vector.shape_cast %5 : vector<9x128xf32> to vector<9x1x1x128xf32>
    %c0_4 = arith.constant 0 : index
    %c0_5 = arith.constant 0 : index
    %7 = vector.load %arg4[%c0_4, %c0_5] : memref<1x128xf32, #tpu.memory_space<vmem>>, vector<1x128xf32>
    %8 = vector.shape_cast %7 : vector<1x128xf32> to vector<1x1x128xf32>
    %9 = vector.extract_strided_slice %4 {offsets = [0, 0, 0], sizes = [10, 16, 128], strides = [1, 1, 1]} : vector<10x24x128xf32> to vector<10x16x128xf32>
    %10 = vector.extract_strided_slice %9 {offsets = [0, 0, 0], sizes = [8, 16, 128], strides = [1, 1, 1]} : vector<10x16x128xf32> to vector<8x16x128xf32>
    %11 = vector.extract_strided_slice %6 {offsets = [0, 0, 0, 0], sizes = [1, 1, 1, 128], strides = [1, 1, 1, 1]} : vector<9x1x1x128xf32> to vector<1x1x1x128xf32>
    %12 = vector.shape_cast %11 : vector<1x1x1x128xf32> to vector<1x1x128xf32>
    %13 = vector.broadcast %12 : vector<1x1x128xf32> to vector<8x16x128xf32>
    %14 = arith.mulf %10, %13 : vector<8x16x128xf32>
    %15 = vector.extract_strided_slice %9 {offsets = [1, 0, 0], sizes = [8, 16, 128], strides = [1, 1, 1]} : vector<10x16x128xf32> to vector<8x16x128xf32>
    %16 = vector.extract_strided_slice %6 {offsets = [3, 0, 0, 0], sizes = [1, 1, 1, 128], strides = [1, 1, 1, 1]} : vector<9x1x1x128xf32> to vector<1x1x1x128xf32>
    %17 = vector.shape_cast %16 : vector<1x1x1x128xf32> to vector<1x1x128xf32>
    %18 = vector.broadcast %17 : vector<1x1x128xf32> to vector<8x16x128xf32>
    %19 = arith.mulf %15, %18 : vector<8x16x128xf32>
    %20 = arith.addf %14, %19 : vector<8x16x128xf32>
    %21 = vector.extract_strided_slice %9 {offsets = [2, 0, 0], sizes = [8, 16, 128], strides = [1, 1, 1]} : vector<10x16x128xf32> to vector<8x16x128xf32>
    %22 = vector.extract_strided_slice %6 {offsets = [6, 0, 0, 0], sizes = [1, 1, 1, 128], strides = [1, 1, 1, 1]} : vector<9x1x1x128xf32> to vector<1x1x1x128xf32>
    %23 = vector.shape_cast %22 : vector<1x1x1x128xf32> to vector<1x1x128xf32>
    %24 = vector.broadcast %23 : vector<1x1x128xf32> to vector<8x16x128xf32>
    %25 = arith.mulf %21, %24 : vector<8x16x128xf32>
    %26 = arith.addf %20, %25 : vector<8x16x128xf32>
    %c23_i32 = arith.constant 23 : i32
    %27 = tpu.dynamic_rotate %4 by %c23_i32 dim 1 : vector<10x24x128xf32>, i32 -> vector<10x24x128xf32>
    %28 = vector.extract_strided_slice %27 {offsets = [0, 0, 0], sizes = [10, 16, 128], strides = [1, 1, 1]} : vector<10x24x128xf32> to vector<10x16x128xf32>
    %29 = vector.extract_strided_slice %28 {offsets = [0, 0, 0], sizes = [8, 16, 128], strides = [1, 1, 1]} : vector<10x16x128xf32> to vector<8x16x128xf32>
    %30 = vector.extract_strided_slice %6 {offsets = [1, 0, 0, 0], sizes = [1, 1, 1, 128], strides = [1, 1, 1, 1]} : vector<9x1x1x128xf32> to vector<1x1x1x128xf32>
    %31 = vector.shape_cast %30 : vector<1x1x1x128xf32> to vector<1x1x128xf32>
    %32 = vector.broadcast %31 : vector<1x1x128xf32> to vector<8x16x128xf32>
    %33 = arith.mulf %29, %32 : vector<8x16x128xf32>
    %34 = arith.addf %26, %33 : vector<8x16x128xf32>
    %35 = vector.extract_strided_slice %28 {offsets = [1, 0, 0], sizes = [8, 16, 128], strides = [1, 1, 1]} : vector<10x16x128xf32> to vector<8x16x128xf32>
    %36 = vector.extract_strided_slice %6 {offsets = [4, 0, 0, 0], sizes = [1, 1, 1, 128], strides = [1, 1, 1, 1]} : vector<9x1x1x128xf32> to vector<1x1x1x128xf32>
    %37 = vector.shape_cast %36 : vector<1x1x1x128xf32> to vector<1x1x128xf32>
    %38 = vector.broadcast %37 : vector<1x1x128xf32> to vector<8x16x128xf32>
    %39 = arith.mulf %35, %38 : vector<8x16x128xf32>
    %40 = arith.addf %34, %39 : vector<8x16x128xf32>
    %41 = vector.extract_strided_slice %28 {offsets = [2, 0, 0], sizes = [8, 16, 128], strides = [1, 1, 1]} : vector<10x16x128xf32> to vector<8x16x128xf32>
    %42 = vector.extract_strided_slice %6 {offsets = [7, 0, 0, 0], sizes = [1, 1, 1, 128], strides = [1, 1, 1, 1]} : vector<9x1x1x128xf32> to vector<1x1x1x128xf32>
    %43 = vector.shape_cast %42 : vector<1x1x1x128xf32> to vector<1x1x128xf32>
    %44 = vector.broadcast %43 : vector<1x1x128xf32> to vector<8x16x128xf32>
    %45 = arith.mulf %41, %44 : vector<8x16x128xf32>
    %46 = arith.addf %40, %45 : vector<8x16x128xf32>
    %c22_i32 = arith.constant 22 : i32
    %47 = tpu.dynamic_rotate %4 by %c22_i32 dim 1 : vector<10x24x128xf32>, i32 -> vector<10x24x128xf32>
    %48 = vector.extract_strided_slice %47 {offsets = [0, 0, 0], sizes = [10, 16, 128], strides = [1, 1, 1]} : vector<10x24x128xf32> to vector<10x16x128xf32>
    %49 = vector.extract_strided_slice %48 {offsets = [0, 0, 0], sizes = [8, 16, 128], strides = [1, 1, 1]} : vector<10x16x128xf32> to vector<8x16x128xf32>
    %50 = vector.extract_strided_slice %6 {offsets = [2, 0, 0, 0], sizes = [1, 1, 1, 128], strides = [1, 1, 1, 1]} : vector<9x1x1x128xf32> to vector<1x1x1x128xf32>
    %51 = vector.shape_cast %50 : vector<1x1x1x128xf32> to vector<1x1x128xf32>
    %52 = vector.broadcast %51 : vector<1x1x128xf32> to vector<8x16x128xf32>
    %53 = arith.mulf %49, %52 : vector<8x16x128xf32>
    %54 = arith.addf %46, %53 : vector<8x16x128xf32>
    %55 = vector.extract_strided_slice %48 {offsets = [1, 0, 0], sizes = [8, 16, 128], strides = [1, 1, 1]} : vector<10x16x128xf32> to vector<8x16x128xf32>
    %56 = vector.extract_strided_slice %6 {offsets = [5, 0, 0, 0], sizes = [1, 1, 1, 128], strides = [1, 1, 1, 1]} : vector<9x1x1x128xf32> to vector<1x1x1x128xf32>
    %57 = vector.shape_cast %56 : vector<1x1x1x128xf32> to vector<1x1x128xf32>
    %58 = vector.broadcast %57 : vector<1x1x128xf32> to vector<8x16x128xf32>
    %59 = arith.mulf %55, %58 : vector<8x16x128xf32>
    %60 = arith.addf %54, %59 : vector<8x16x128xf32>
    %61 = vector.extract_strided_slice %48 {offsets = [2, 0, 0], sizes = [8, 16, 128], strides = [1, 1, 1]} : vector<10x16x128xf32> to vector<8x16x128xf32>
    %62 = vector.extract_strided_slice %6 {offsets = [8, 0, 0, 0], sizes = [1, 1, 1, 128], strides = [1, 1, 1, 1]} : vector<9x1x1x128xf32> to vector<1x1x1x128xf32>
    %63 = vector.shape_cast %62 : vector<1x1x1x128xf32> to vector<1x1x128xf32>
    %64 = vector.broadcast %63 : vector<1x1x128xf32> to vector<8x16x128xf32>
    %65 = arith.mulf %61, %64 : vector<8x16x128xf32>
    %66 = arith.addf %60, %65 : vector<8x16x128xf32>
    %67 = vector.broadcast %8 : vector<1x1x128xf32> to vector<8x16x128xf32>
    %68 = arith.addf %66, %67 : vector<8x16x128xf32>
    %cst = arith.constant 0.000000e+00 : f32
    %69 = vector.broadcast %cst : f32 to vector<8x16x128xf32>
    %70 = arith.maximumf %68, %69 : vector<8x16x128xf32>
    %71 = vector.shape_cast %70 : vector<8x16x128xf32> to vector<128x128xf32>
    %c0_6 = arith.constant 0 : index
    %c0_7 = arith.constant 0 : index
    %72 = vector.load %arg5[%c0_6, %c0_7] : memref<128x128xf32, #tpu.memory_space<vmem>>, vector<128x128xf32>
    %cst_8 = arith.constant dense<0.000000e+00> : vector<128x128xf32>
    %73 = tpu.matmul %71, %72, %cst_8 {dimension_numbers = #tpu.dot_dimension_numbers<[1], [0], [0], [1], [0, 0, 1, 1], [], []>} : vector<128x128xf32>, vector<128x128xf32>, vector<128x128xf32> -> vector<128x128xf32>
    %c0_9 = arith.constant 0 : index
    %c0_10 = arith.constant 0 : index
    %74 = vector.load %arg6[%c0_9, %c0_10] : memref<1x128xf32, #tpu.memory_space<vmem>>, vector<1x128xf32>
    %75 = vector.broadcast %74 : vector<1x128xf32> to vector<128x128xf32>
    %76 = arith.addf %73, %75 : vector<128x128xf32>
    %cst_11 = arith.constant 0.000000e+00 : f32
    %77 = vector.broadcast %cst_11 : f32 to vector<128x128xf32>
    %78 = arith.maximumf %76, %77 : vector<128x128xf32>
    %c0_12 = arith.constant 0 : index
    %c0_13 = arith.constant 0 : index
    %c0_14 = arith.constant 0 : index
    %79 = vector.load %arg7[%c0_12, %c0_13, %c0_14] : memref<1x128x128xf32, #tpu.memory_space<vmem>>, vector<1x128x128xf32>
    %80 = vector.shape_cast %79 : vector<1x128x128xf32> to vector<128x128xf32>
    %81 = vector.shape_cast %78 : vector<128x128xf32> to vector<1x128x128xf32>
    tpu.vector_store %arg7[%c0_12, %c0_13, %c0_14], %81 {strides = array<i32>} : memref<1x128x128xf32, #tpu.memory_space<vmem>>, vector<1x128x128xf32>,
    return
  }
  func.func @transform_0(%arg0: i32, %arg1: i32) -> (i32, i32, i32, i32) {
    %c0_i32 = arith.constant 0 : i32
    %c0_i32_0 = arith.constant 0 : i32
    %c0_i32_1 = arith.constant 0 : i32
    %c0_i32_2 = arith.constant 0 : i32
    return %arg0, %c0_i32, %c0_i32_0, %c0_i32_1 : i32, i32, i32, i32
  }
  func.func @transform_1(%arg0: i32, %arg1: i32) -> (i32, i32) {
    %c0_i32 = arith.constant 0 : i32
    %c0_i32_0 = arith.constant 0 : i32
    %c0_i32_1 = arith.constant 0 : i32
    return %c0_i32, %c0_i32_0 : i32, i32
  }
  func.func @transform_2(%arg0: i32, %arg1: i32) -> (i32, i32) {
    %c0_i32 = arith.constant 0 : i32
    %c0_i32_0 = arith.constant 0 : i32
    %c0_i32_1 = arith.constant 0 : i32
    return %c0_i32, %c0_i32_0 : i32, i32
  }
  func.func @transform_3(%arg0: i32, %arg1: i32) -> (i32, i32) {
    %c0_i32 = arith.constant 0 : i32
    %c0_i32_0 = arith.constant 0 : i32
    %c0_i32_1 = arith.constant 0 : i32
    return %c0_i32, %c0_i32_0 : i32, i32
  }
  func.func @transform_4(%arg0: i32, %arg1: i32) -> (i32, i32) {
    %c0_i32 = arith.constant 0 : i32
    %c0_i32_0 = arith.constant 0 : i32
    %c0_i32_1 = arith.constant 0 : i32
    return %c0_i32, %c0_i32_0 : i32, i32
  }
  func.func @transform_5(%arg0: i32, %arg1: i32) -> (i32, i32, i32) {
    %c0_i32 = arith.constant 0 : i32
    %c0_i32_0 = arith.constant 0 : i32
    return %arg0, %arg1, %c0_i32 : i32, i32, i32
  }
}

</mosaic_0001>

<bundles_post_ra>
// kernel: tpu_custom_call.1
= control target key start
LH: loop header
LB: loop body
LE: loop exit
PB: predicated region body
PF: predicated region fallthrough
CT: control target
= control target key end

     0   :  { %s2665_s0 = inlined_call_operand.hbm [shape: f32[2,18,24,128], index: 0, kind: input, shape index: {}]   ;;  %s2666_s1 = inlined_call_operand.hbm [shape: f32[9,128], index: 1, kind: input, shape index: {}]   ;;  %s2667_s2 = inlined_call_operand.vmem [shape: f32[1,128], index: 2, kind: input, shape index: {}]   ;;  %s2668_s3 = inlined_call_operand.hbm [shape: f32[128,128], index: 3, kind: input, shape index: {}]   ;;  %s2669_s4 = inlined_call_operand.vmem [shape: f32[1,128], index: 4, kind: input, shape index: {}]   ;;  %s2670_s5 = inlined_call_operand.hbm [shape: f32[2,256,128], index: 5, kind: output, shape index: {}]  }
   0x1   :  { %2704 = sst [smem:[#allocation28_spill]] %s2666_s1 }
   0x2   :  { %2705 = sst [smem:[#allocation29_spill]] %s2668_s3 }
   0x3   :  { %2706 = sst [smem:[#allocation30_spill]] %s2670_s5 }
   0x4   :  { %10 = vsyncpa [#allocation3], 0 }
   0x5   :  { %12 = vsyncpa [#allocation3 + $0x1], 0 }
   0x6   :  { %13 = vsyncpa [#allocation6], 0 }
   0x7   :  { %14 = vsyncpa [#allocation4], 0 }
   0x8   :  { %16 = vsyncpa [#allocation4 + $0x1], 0  ;;  %s1637_s18 = smov 0   ;;  %s1639_s19 = smov 0  }
   0x9   :  { %s1641_s20 = smov 0   ;;  %s1643_s21 = smov 0  }
   0xa   :  { %s1645_s22 = smov 0   ;;  %s1647_s23 = smov 0  }
   0xb   :  { %s1649_s24 = smov 0   ;;  %s1651_s25 = smov 0  }
   0xc   :  { %s1653_s26 = smov 0   ;;  %s1655_s27 = smov 0  }
   0xd   :  { %s1657_s28 = smov 0  }
   0xe LB: > { %2707 = sst [smem:[#allocation12_spill]] %s1557_s18  ;;  %s1097_s29 = sadd.s32 4294967295, %s1597_s28   ;;  %s1597_s28 = sphi %s1657_s28, %s22_s28   ;;  %s1593_s27 = sphi %s1655_s27, %s2770_s27   ;;  %s1589_s26 = sphi %s1653_s26, %s2762_s26   ;;  %s1585_s25 = sphi %s1651_s25, %s2769_s25   ;;  %s1581_s24 = sphi %s1649_s24, %s2761_s24   ;;  %s1577_s23 = sphi %s1647_s23, %s2768_s23   ;;  %s1573_s22 = sphi %s1645_s22, %s2767_s22   ;;  %s1569_s21 = sphi %s1643_s21, %s2766_s21   ;;  %s1565_s20 = sphi %s1641_s20, %s2765_s20   ;;  %s1561_s19 = sphi %s1639_s19, %s2764_s19   ;;  %s1557_s18 = sphi %s1637_s18, %s2763_s18  }
   0xf   : > { %2708 = sst [smem:[#allocation13_spill]] %s1589_s26  ;;  %s1098_s30 = sadd.s32 4294967294, %s1597_s28  }
  0x10   : > { %p54_p0 = scmp.ne.s32.totalorder %s1573_s22, %s1569_s21  ;;  %p1693_p1 = scmp.eq.s32.totalorder %s1097_s29, 0 }
  0x11   : > { %p163_p2 = scmp.ne.s32.totalorder %s1565_s20, %s1561_s19  ;;  %p164_p4 = scmp.eq.s32.totalorder %s1097_s29, 3 }
  0x12   : > { %s2709_s6 = scalar_select %p1693_p1, 1, 0 }
  0x13   : > { %p1702_p3 = por %p1693_p1, %p54_p0  ;;  %p169_p5 = scmp.ne.s32.totalorder %s1561_s19, %s1557_s18 }
  0x14   : > { %p170_p6 = scmp.eq.s32.totalorder %s1098_s30, 3  ;;  %p1708_p7 = por %p164_p4, %p163_p2 }
  0x15   : > { %s2710_s8 = scalar_select %p1702_p3, 1, 0 }
  0x16   : > { %s2711_s9 = scalar_select %p1708_p7, 1, 0 }
  0x17   : > { %p1099_p8 = scmp.ge.s32.totalorder %s1597_s28, 1  ;;  %p1713_p9 = por %p170_p6, %p169_p5 }
  0x18   : > { %2712 = sst [smem:[#allocation14_spill]] %s2711_s9  ;;  %p177_p10 = scmp.lt.s32.totalorder %s1597_s28, 5 }
  0x19   : > { %s2713_s10 = scalar_select %p1713_p9, 1, 0 }
  0x1a   : > { %p1718_p11 = pnand %p1099_p8, %p177_p10  ;;  %s1599_s12 = smov [#allocation5]  }
  0x1b   : > { %2714 = sst [smem:[#allocation15_spill]] %s2713_s10  ;;  %s189_s13 = sshll.u32 %s1599_s12, 4  ;;  %s190_s13 = int_to_ptr.vmem [resolvable:$true] %s189_s13 }
  0x1c   : > { %s2715_s11 = scalar_select %p1718_p11, 1, 0 }
  0x1d   : > { %p1270_p12 = pneg %p1718_p11  ;;  %s1600_s15 = smov [#allocation7]  }
  0x1e   : > { %s205_s16 = sshll.u32 %s1600_s15, 4  ;;  %s2717_s1 = sld [smem:[#allocation28_spill]]  ;;  %s1730_s16 = int_to_ptr.vmem [resolvable:$true] %s205_s16 }
  0x1f   : > { %p1726_p13 = pnand %p1270_p12, %p1693_p1 }
  0x21   : > { %p1387_p2 = pneg %p1726_p13 }
  0x24   : > { %s1385_s29 = scalar_lea.hbm %s2717_s1, 256 }
  0x25   : > { %p1386_p0 = scmp.ne.s32.totalorder %s2717_s1, %s1385_s29  ;;  %p1392_p6 = scmp.lt.u32.totalorder %s1385_s29, %s2717_s1 }
  0x27   : > { %p1388_p4 = pnand %p1387_p2, %p1386_p0 }
  0x29   : > { %p1389_p5 = pneg %p1388_p4 }
  0x2b   : > { %p1394_p8 = pnand %p1392_p6, %p1389_p5 }
  0x2d   : > { %1397 = shalt.err (!%p1394_p8)
}
  0x2e   : > { %s1398_s15 = scalar_lea.vmem %s190_s13, 256  ;;  %p1406_p7 = scmp.lt.s32.totalorder %s190_s13, %s190_s13 }
  0x2f   : > { %p1399_p10 = scmp.ne.s32.totalorder %s190_s13, %s1398_s15  ;;  %p1407_p1 = scmp.lt.s32.totalorder %s1398_s15, %s1398_s15 }
  0x31   : > { %p1401_p12 = pnand %p1399_p10, %p1387_p2  ;;  %p1408_p3 = por %p1407_p1, %p1406_p7 }
  0x33   : > { %p1402_p9 = pneg %p1401_p12 }
  0x35   : > { %p1409_p11 = pnand %p1408_p3, %p1402_p9 }
  0x37   : > { %1412 = shalt.err (!%p1409_p11)
}
  0x38   : > { %s2681_s17 = smov 128   ;;  %s2682_s21 = smov 8  }
  0x39   : > { %1273 = dma.hbm_to_vmem [thread:$0]  (!%p1726_p13), %s2717_s1, 256, %s190_s13, [#allocation6], %s2681_s17, %s2681_s17, %s2682_s21  }
  0x3a   : > { %s2718_s3 = sld [smem:[#allocation29_spill]] }
  0x40   : > { %s1413_s12 = scalar_lea.hbm %s2718_s3, 2048 }
  0x41   : > { %p1414_p1 = scmp.ne.s32.totalorder %s2718_s3, %s1413_s12  ;;  %p1420_p9 = scmp.lt.u32.totalorder %s1413_s12, %s2718_s3 }
  0x43   : > { %p1416_p3 = pnand %p1414_p1, %p1387_p2 }
  0x45   : > { %p1417_p7 = pneg %p1416_p3 }
  0x47   : > { %p1422_p11 = pnand %p1420_p9, %p1417_p7 }
  0x49   : > { %1425 = shalt.err (!%p1422_p11)
}
  0x4a   : > { %s1426_s13 = scalar_lea.vmem %s1730_s16, 2048  ;;  %p1434_p6 = scmp.lt.s32.totalorder %s1730_s16, %s1730_s16 }
  0x4b   : > { %p1427_p0 = scmp.ne.s32.totalorder %s1730_s16, %s1426_s13  ;;  %p1435_p8 = scmp.lt.s32.totalorder %s1426_s13, %s1426_s13 }
  0x4d   : > { %p1429_p4 = pnand %p1427_p0, %p1387_p2  ;;  %p1436_p10 = por %p1435_p8, %p1434_p6 }
  0x4f   : > { %p1430_p5 = pneg %p1429_p4 }
  0x51   : > { %p1437_p12 = pnand %p1436_p10, %p1430_p5 }
  0x53   : > { %1440 = shalt.err (!%p1437_p12)
}
  0x54   : > { %1276 = dma.hbm_to_vmem [thread:$0]  (!%p1726_p13), %s2718_s3, 2048, %s1730_s16, [#allocation6], %s2681_s17, %s2681_s17, %s2682_s21  }
  0x55   : > { %s31_s9 = sadd.s32 1, %s1589_s26  ;;  %s34_s14 = sadd.s32 1, %s1593_s27 }
  0x56   : > { %p32_p2 = scmp.ge.s32.totalorder %s31_s9, 2  ;;  %s41_s7 = sadd.s32 1, %s1577_s23 }
  0x57   : > { %p48_p1 = scmp.ne.s32.totalorder %s1577_s23, %s1573_s22  ;;  %p49_p3 = scmp.eq.s32.totalorder %s1597_s28, 0 }
  0x58   : > { %s2772_s9 = smov (%p32_p2, %s31_s9), 0  ;;  %s2774_s14 = smov (!%p32_p2, %s34_s14), %s1593_s27 }
  0x59   : > { %2719 = sst [smem:[#allocation16_spill]] %s2772_s9  ;;  %p1794_p7 = por %p49_p3, %p48_p1 }
  0x5a   : > { %s149_s29 = ssub.s32 %s1589_s26, %s2772_s9  ;;  %p36_p13 = scmp.ge.s32.totalorder %s2774_s14, 2 }
  0x5b   : > { %p1287_p9 = scmp.lt.s32.totalorder %s1597_s28, 4  ;;  %s222_s16 = sand.u32 1, %s1577_s23  }
  0x5c   : > { %s1256_s30 = smul.u32 6912, %s1593_s27  ;;  %s2776_s14 = smov (%p36_p13, %s2774_s14), 0 }
  0x5d   : > { %s1255_s12 = smul.u32 432, %s222_s16  ;;  %s38_s15 = ssub.s32 %s1593_s27, %s2776_s14 }
  0x5e   : > { %s1810_s18 = scalar_lea.hbm %s2665_s0, %s1256_s30  ;;  %p39_p11 = scmp.eq.s32.totalorder %s38_s15, 0 }
  0x5f   : > { %s150_s17 = sor.u32 %s149_s29, %s38_s15  ;;  %s2721_s1 = sadd.s32 1, %s1565_s20 }
  0x60   : > { %p151_p0 = scmp.eq.s32.totalorder %s150_s17, 0  ;;  %s226_s9 = scalar_lea.vmem [#allocation2], %s1255_s12 }
  0x61   : > { %s1813_s21 = scalar_select %p39_p11, %s1577_s23, %s41_s7  }
  0x62   : > { %s1818_s3 = scalar_select %p151_p0, %s1565_s20, %s2721_s1  }
  0x63   : > { %s233_s26 = sshll.u32 %s226_s9, 4  ;;  %p1824_p4 = pnand %p1287_p9, %p1794_p7  ;;  %s1828_s26 = int_to_ptr.vmem [resolvable:$true] %s233_s26 }
  0x64   : > { %s1830_s29 = scalar_lea.sflag [#allocation3], %s222_s16  ;;  %s1441_s17 = scalar_lea.hbm %s1810_s18, 6912 }
  0x65   : > { %p1442_p5 = scmp.ne.s32.totalorder %s1810_s18, %s1441_s17  ;;  %p1443_p6 = pneg %p1824_p4 }
  0x66   : > { %s1446_s7 = scalar_lea.hbm %s2665_s0, 13824  ;;  %p1447_p12 = scmp.lt.u32.totalorder %s1810_s18, %s2665_s0 }
  0x67   : > { %p1444_p8 = pnand %p1443_p6, %p1442_p5  ;;  %p1448_p2 = scmp.lt.u32.totalorder %s1446_s7, %s1441_s17 }
  0x68   : > { %p1450_p3 = scmp.lt.u32.totalorder %s1441_s17, %s1810_s18 }
  0x69   : > { %p1445_p10 = pneg %p1444_p8  ;;  %p1449_p1 = por %p1448_p2, %p1447_p12 }
  0x6b   : > { %p1451_p7 = por %p1450_p3, %p1449_p1 }
  0x6d   : > { %p1452_p13 = pnand %p1451_p7, %p1445_p10 }
  0x6f   : > { %1455 = shalt.err (!%p1452_p13)
}
  0x70   : > { %s1456_s16 = scalar_lea.vmem %s1828_s26, 6912  ;;  %s1603_s12 = smov [#allocation2]  }
  0x71   : > { %p1457_p9 = scmp.ne.s32.totalorder %s1828_s26, %s1456_s16  ;;  %s1461_s15 = sshll.u32 %s1603_s12, 4  ;;  %s1462_s15 = int_to_ptr.vmem [resolvable:$false] %s1461_s15 }
  0x72   : > { %s1463_s5 = scalar_lea.vmem %s1462_s15, 13824  ;;  %p1464_p5 = scmp.lt.s32.totalorder %s1828_s26, %s1462_s15 }
  0x73   : > { %p1459_p11 = pnand %p1457_p9, %p1443_p6  ;;  %p1465_p8 = scmp.lt.s32.totalorder %s1463_s5, %s1456_s16 }
  0x75   : > { %p1460_p0 = pneg %p1459_p11  ;;  %p1466_p12 = por %p1465_p8, %p1464_p5 }
  0x77   : > { %p1467_p2 = pnand %p1466_p12, %p1460_p0 }
  0x79   : > { %1470 = shalt.err (!%p1467_p2)
}
  0x7a   : > { %s2723_s17 = smov 8   ;;  %s2724_s1 = smov 128  }
  0x7b   : > { %1280 = dma.hbm_to_vmem [thread:$0]  (!%p1824_p4), %s1810_s18, 6912, %s1828_s26, %s1830_s29, %s2724_s1, %s2724_s1, %s2723_s17  }
  0x7c   : > { %p2725_p6 = scmp.ne.s32.totalorder %s2715_s11, 0 }
  0x7e   : > { %245 = sbr.rel (%p2725_p6) target bundleno = 495 (0x1ef), region = 40 }
  0x85   : > { %s247_s9 = sand.u32 1, %s1573_s22   ;;  %p2726_p10 = scmp.ne.s32.totalorder %s2710_s8, 0 }
  0x86   : > { %s1257_s7 = smul.u32 432, %s247_s9  ;;  %s248_s10 = scalar_lea.sflag [#allocation3], %s247_s9 }
  0x88   : > { %s251_s30 = scalar_lea.vmem [#allocation2], %s1257_s7 }
  0x89   : > { %1544 = dma.done.wait (%p2726_p10), %s248_s10, 6912  }
  0x8a   : > { %1546 = vsyncadd (%p2726_p10), %s248_s10, 4294960384  ;;  %p2727_p1 = scmp.ne.s32.totalorder %s2709_s6, 0 }
  0x8c   : > { %1548 = dma.done.wait (%p2727_p1), [#allocation6], 2304  }
  0x8d   : > { %1550 = vsyncadd (%p2727_p1), [#allocation6], 4294964992  ;;  %v323_v0 = vlaneseq  ;;  %s1109_s26 = smul.u32 192, %s1581_s24  ;;  %v773_v2 = vld [vmem:[#allocation7] sm:$0xff]  ;;  %v774_v3 = vld [vmem:[#allocation7 + $0x8] sm:$0xff]  ;;  %s283_s18 = sand.u32 1, %s1561_s19  }
  0x8e   : > { %v775_v4 = vld [vmem:[#allocation7 + $0x10] sm:$0xff]  ;;  %v1207_v5 = vpack.c.bf16 %v774_v3, %v773_v2  ;;  %v776_v6 = vld [vmem:[#allocation7 + $0x18] sm:$0xff]  ;;  %v777_v7 = vld [vmem:[#allocation7 + $0x20] sm:$0xff]  ;;  %s1107_s16 = sshll.u32 %s283_s18, 7  ;;  %s1114_s15 = sshll.u32 %s1581_s24, 4 }
  0x8f   : > { %v1873_v1 = vshrl.u32 %v323_v0, 7  ;;  %v1211_v8 = vpack.c.bf16 %v776_v6, %v775_v4  ;;  %v778_v9 = vld [vmem:[#allocation7 + $0x28] sm:$0xff]  ;;  %v779_v10 = vld [vmem:[#allocation7 + $0x30] sm:$0xff]  ;;  %v780_v11 = vld [vmem:[#allocation7 + $0x38] sm:$0xff]  ;;  %s1875_s8 = scalar_lea.vmem %s251_s30, %s1109_s26 [#allocation2]  ;;  %s2560_s12 = scalar_lea.vmem [#allocation8], %s1107_s16 }
  0x90   : > { %1208 = vmatprep.subr.bf16.mxu0 %v1207_v5  ;;  %1239 = vmatprep.subr.bf16.mxu1 %v1207_v5  ;;  %v781_v12 = vld [vmem:[#allocation7 + $0x40] sm:$0xff]  ;;  %v782_v13 = vld [vmem:[#allocation7 + $0x48] sm:$0xff]  ;;  %v783_v14 = vld [vmem:[#allocation7 + $0x50] sm:$0xff]  ;;  %v1215_v23 = vpack.c.bf16 %v778_v9, %v777_v7  ;;  %v1219_v30 = vpack.c.bf16 %v780_v11, %v779_v10  ;;  %s1115_s5 = sshll.u32 %s1585_s25, 5  ;;  %s2754_s9 = sld [smem:[#allocation14_spill]] }
  0x91   : > { %v325_v15 = vsub.s32 0, %v1873_v1  ;;  %v345_v16 = vsub.s32 3, %v1873_v1  ;;  %v381_v17 = vsub.s32 6, %v1873_v1  ;;  %1210 = vmatpush3.bf16.msra.mxu0 %v1207_v5  ;;  %1247 = vmatpush3.bf16.msra.mxu1 %v1207_v5  ;;  %v784_v18 = vld [vmem:[#allocation7 + $0x58] sm:$0xff]  ;;  %v785_v19 = vld [vmem:[#allocation7 + $0x60] sm:$0xff]  ;;  %v786_v20 = vld [vmem:[#allocation7 + $0x68] sm:$0xff]  ;;  %v1892_v31 = vpack.c.bf16 %v782_v13, %v781_v12  ;;  %s986_s17 = sadd.s32 %s1115_s5, %s1114_s15 }
  0x92   : > { %vm447_vm0 = vcmp.lt.s32.totalorder %v1873_v1, 7  ;;  %v470_v21 = vsub.s32 1, %v1873_v1  ;;  %v506_v22 = vsub.s32 4, %v1873_v1  ;;  %1212 = vmatprep.subr.bf16.mxu0 %v1211_v8  ;;  %1240 = vmatprep.subr.bf16.mxu1 %v1211_v8  ;;  %v787_v24 = vld [vmem:[#allocation7 + $0x70] sm:$0xff]  ;;  %v1887_v26 = vld [vmem:[%s1875_s8 + $0x8] sm:$0xff]  ;;  %v542_v27 = vsub.s32 7, %v1873_v1 }
  0x93   : > { %v1884_v25 = vld [vmem:[%s1875_s8] sm:$0xff]  ;;  %v629_v28 = vsub.s32 2, %v1873_v1  ;;  %v665_v29 = vsub.s32 5, %v1873_v1  ;;  %v788_v32 = vld [vmem:[#allocation7 + $0x78] sm:$0xff]  ;;  %v293_v33 = vld [vmem:[%s1875_s8 + $0x18] sm:$0xff]  ;;  %v425_v36 = vrot.slane %v1887_v26, 1  ;;  %v1900_v37 = vpack.c.bf16 %v784_v18, %v783_v14 }
  0x94   : > { %v1896_v34 = vld [vmem:[%s1875_s8 + $0x30] sm:$0xff]  ;;  %v415_v35 = vrot.slane %v1884_v25, 1  ;;  %v1902_v38 = vpack.c.bf16 %v786_v20, %v785_v19  ;;  %v1905_v39 = vld [vmem:[%s1875_s8 + $0x20] sm:$0xff]  ;;  %v416_v41 = vrot.slane %v293_v33, 1  ;;  %v1909_v43 = vld [vmem:[%s1875_s8 + $0x38] sm:$0xff]  ;;  %v1918_v48 = vpack.c.bf16 %v788_v32, %v787_v24  ;;  %s1116_s1 = sshll.u32 %s986_s17, 7 }
  0x95   : > { %v320_v40 = vld [vmem:[#allocation5] sm:$0xff]  ;;  %v417_v42 = vrot.slane %v1896_v34, 1  ;;  %1214 = vmatpush3.bf16.msra.mxu0 %v1211_v8  ;;  %1248 = vmatpush3.bf16.msra.mxu1 %v1211_v8  ;;  %v426_v47 = vrot.slane %v1905_v39, 1  ;;  %v427_v49 = vrot.slane %v1909_v43, 1  ;;  %v576_v55 = vrot.slane %v1884_v25, 2  ;;  %v1999_v20 = vld [vmem:[%s1875_s8 + $0x68] sm:$0xff] }
  0x96   : > { %v1911_v44 = vrot.slane %v320_v40, %v325_v15  ;;  %v1913_v45 = vrot.slane %v320_v40, %v345_v16  ;;  %v1915_v46 = vrot.slane %v320_v40, %v381_v17  ;;  %1216 = vmatprep.subr.bf16.mxu0 %v1215_v23  ;;  %1241 = vmatprep.subr.bf16.mxu1 %v1215_v23  ;;  %v577_v63 = vrot.slane %v293_v33, 2  ;;  %v1974_v12 = vld [vmem:[%s1875_s8 + $0x60] sm:$0xff]  ;;  %v1988_v16 = vld [vmem:[%s1875_s8 + $0x78] sm:$0xff]  ;;  %s989_s7 = sshll.u32 %s2560_s12, 4  ;;  %s2755_s10 = sld [smem:[#allocation30_spill]]  ;;  %s2598_s7 = int_to_ptr.vmem [resolvable:$true] %s989_s7 }
  0x97   : > { %v1921_v50 = vrot.slane %v320_v40, %v470_v21  ;;  %v1923_v51 = vrot.slane %v320_v40, %v506_v22  ;;  %v458_v54 = vsel %vm447_vm0, %v415_v35, %v425_v36  ;;  %v459_v59 = vsel %vm447_vm0, %v416_v41, %v426_v47  ;;  %2728 = vst [vmem:[#allocation17_spill] sm:$0xff] %v1988_v16  ;;  %v2002_v21 = vld [vmem:[%s1875_s8 + $0x90] sm:$0xff]  ;;  %v2004_v22 = vld [vmem:[#allocation5 + $0x8] ss:$0 sm:$0xff]  ;;  %v2026_v35 = vld [vmem:[%s1875_s8 + $0x98] sm:$0xff]  ;;  %s2604_s26 = scalar_lea.sflag [#allocation4], %s283_s18 }
  0x98   : > { %v327_v52 = vmul.f32 %v1911_v44, %v1884_v25  ;;  %v1929_v53 = vmul.f32 %v1911_v44, %v1887_v26  ;;  %v1937_v56 = vmul.f32 %v1911_v44, %v293_v33  ;;  %v347_v57 = vmul.f32 %v1913_v45, %v293_v33  ;;  %2730 = vst [vmem:[#allocation19_spill] sm:$0xff] %v1999_v20  ;;  %p2756_p3 = scmp.ne.s32.totalorder %s2754_s9, 0  ;;  %s1604_s6 = smov [#allocation8]  }
  0x99   : > { %v383_v58 = vmul.f32 %v1915_v46, %v1896_v34  ;;  %1218 = vmatpush3.bf16.msra.mxu0 %v1215_v23  ;;  %1249 = vmatpush3.bf16.msra.mxu1 %v1215_v23  ;;  %v1948_v60 = vmul.f32 %v1911_v44, %v1905_v39  ;;  %v1952_v61 = vmul.f32 %v1913_v45, %v1905_v39  ;;  %vm606_vm1 = vcmp.lt.s32.totalorder %v1873_v1, 6  ;;  %s1475_s11 = sshll.u32 %s1604_s6, 4  ;;  %s1476_s11 = int_to_ptr.vmem [resolvable:$false] %s1475_s11 }
  0x9a   : > { %v1958_v62 = vsel %vm447_vm0, %v417_v42, %v427_v49  ;;  %1220 = vmatprep.subr.bf16.mxu0 %v1219_v30  ;;  %1242 = vmatprep.subr.bf16.mxu1 %v1219_v30  ;;  %v363_v0 = vadd.f32 %v347_v57, %v327_v52  ;;  %v472_v2 = vmul.f32 %v1921_v50, %v458_v54  ;;  %v578_v5 = vrot.slane %v1896_v34, 2  ;;  %s1477_s13 = scalar_lea.vmem %s1476_s11, 4096  ;;  %p1478_p9 = scmp.lt.s32.totalorder %s2598_s7, %s1476_s11 }
  0x9b   : > { %v508_v3 = vmul.f32 %v1923_v51, %v459_v59  ;;  %v1963_v4 = vrot.slane %v320_v40, %v542_v27  ;;  %v586_v6 = vrot.slane %v1887_v26, 2  ;;  %v587_v7 = vrot.slane %v1905_v39, 2 }
  0x9c   : > { %v399_v8 = vadd.f32 %v383_v58, %v363_v0  ;;  %v588_v9 = vrot.slane %v1909_v43, 2  ;;  %v1969_v10 = vrot.slane %v320_v40, %v629_v28  ;;  %v1971_v11 = vrot.slane %v320_v40, %v665_v29  ;;  %s2596_s30 = scalar_lea.hbm %s2755_s10, %s1116_s1 }
  0x9d   : > { %1222 = vmatpush3.bf16.msra.mxu0 %v1219_v30  ;;  %1250 = vmatpush3.bf16.msra.mxu1 %v1219_v30  ;;  %v1977_v13 = vmul.f32 %v1921_v50, %v459_v59  ;;  %v617_v14 = vsel %vm606_vm1, %v576_v55, %v586_v6  ;;  %v618_v15 = vsel %vm606_vm1, %v577_v63, %v587_v7  ;;  %v419_v25 = vrot.slane %v1974_v12, 1  ;;  %v2017_v30 = vld [vmem:[%s1875_s8 + $0x80] sm:$0xff] }
  0x9e   : > { %1224 = vmatprep.subr.bf16.mxu0 %v1892_v31  ;;  %1243 = vmatprep.subr.bf16.mxu1 %v1892_v31  ;;  %v1994_v17 = vmul.f32 %v1921_v50, %v1958_v62  ;;  %v488_v18 = vadd.f32 %v472_v2, %v399_v8  ;;  %v544_v19 = vmul.f32 %v1963_v4, %v1958_v62  ;;  %v420_v27 = vrot.slane %v1988_v16, 1 }
  0x9f   : > { %v2010_v23 = vsel %vm606_vm1, %v578_v5, %v588_v9  ;;  %v631_v24 = vmul.f32 %v1969_v10, %v617_v14  ;;  %v667_v29 = vmul.f32 %v1971_v11, %v618_v15  ;;  %v335_v32 = vmul.f32 %v1911_v44, %v1974_v12 }
  0xa0   : > { %2729 = vst [vmem:[#allocation18_spill] sm:$0xff] %v1994_v17  ;;  %v524_v28 = vadd.f32 %v508_v3, %v488_v18  ;;  %v355_v33 = vmul.f32 %v1913_v45, %v1988_v16  ;;  %v391_v40 = vmul.f32 %v1915_v46, %v2002_v21  ;;  %v421_v41 = vrot.slane %v2002_v21, 1 }
  0xa1   : > { %1226 = vmatpush3.bf16.msra.mxu0 %v1892_v31  ;;  %1251 = vmatpush3.bf16.msra.mxu1 %v1892_v31  ;;  %v429_v42 = vrot.slane %v1999_v20, 1  ;;  %v430_v52 = vrot.slane %v2017_v30, 1  ;;  %v703_v55 = vmul.f32 %v2004_v22, %v2010_v23  ;;  %v2688_v57 = vrot.slane %v2026_v35, 1 }
  0xa2   : > { %1228 = vmatprep.subr.bf16.mxu0 %v1900_v37  ;;  %1244 = vmatprep.subr.bf16.mxu1 %v1900_v37  ;;  %v560_v54 = vadd.f32 %v544_v19, %v524_v28  ;;  %v371_v31 = vadd.f32 %v355_v33, %v335_v32  ;;  %v580_v63 = vrot.slane %v1974_v12, 2  ;;  %v581_v0 = vrot.slane %v1988_v16, 2  ;;  %v292_v28 = vld [vmem:[%s1875_s8 + $0x10] sm:$0xff]  ;;  %v2080_v32 = vld [vmem:[%s2667_s2] ss:$0 sm:$0xff] }
  0xa3   : > { %v2042_v58 = vsel %vm447_vm0, %v419_v25, %v429_v42  ;;  %v2048_v59 = vsel %vm447_vm0, %v420_v27, %v430_v52  ;;  %v2056_v5 = vsel %vm447_vm0, %v421_v41, %v2688_v57  ;;  %v2064_v14 = vmul.f32 %v1923_v51, %v1958_v62  ;;  %v295_v41 = vld [vmem:[%s1875_s8 + $0x28] sm:$0xff] }
  0xa4   : > { %2731 = vst [vmem:[#allocation20_spill] sm:$0xff] %v2042_v58  ;;  %2732 = vst [vmem:[#allocation21_spill] sm:$0xff] %v2048_v59  ;;  %v647_v2 = vadd.f32 %v631_v24, %v560_v54  ;;  %v407_v3 = vadd.f32 %v391_v40, %v371_v31  ;;  %v480_v8 = vmul.f32 %v1921_v50, %v2042_v58  ;;  %v582_v19 = vrot.slane %v2002_v21, 2 }
  0xa5   : > { %1230 = vmatpush3.bf16.msra.mxu0 %v1900_v37  ;;  %1252 = vmatpush3.bf16.msra.mxu1 %v1900_v37  ;;  %v516_v18 = vmul.f32 %v1923_v51, %v2048_v59  ;;  %v2686_v24 = vrot.slane %v1999_v20, 2  ;;  %v2073_v25 = vmul.f32 %v1969_v10, %v618_v15  ;;  %v2685_v62 = vrot.slane %v2017_v30, 2 }
  0xa6   : > { %1232 = vmatprep.subr.bf16.mxu0 %v1902_v38  ;;  %1245 = vmatprep.subr.bf16.mxu1 %v1902_v38  ;;  %v683_v37 = vadd.f32 %v667_v29, %v647_v2  ;;  %v496_v27 = vadd.f32 %v480_v8, %v407_v3  ;;  %v2084_v33 = vmul.f32 %v1971_v11, %v2010_v23  ;;  %v2687_v15 = vrot.slane %v2026_v35, 2  ;;  %v298_v8 = vld [vmem:[%s1875_s8 + $0x40] sm:$0xff] }
  0xa7   : > { %v552_v40 = vmul.f32 %v1963_v4, %v2056_v5  ;;  %v2093_v29 = vsel %vm606_vm1, %v580_v63, %v2686_v24  ;;  %v2100_v2 = vsel %vm606_vm1, %v581_v0, %v2685_v62  ;;  %v2109_v63 = vmul.f32 %v1921_v50, %v2048_v59 }
  0xa8   : > { %2733 = vst [vmem:[#allocation22_spill] sm:$0xff] %v2093_v29  ;;  %v719_v54 = vadd.f32 %v703_v55, %v683_v37  ;;  %v532_v31 = vadd.f32 %v516_v18, %v496_v27  ;;  %2734 = vst [vmem:[#allocation23_spill] sm:$0xff] %v2100_v2  ;;  %v639_v3 = vmul.f32 %v1969_v10, %v2093_v29  ;;  %v435_v18 = vrot.slane %v292_v28, 1 }
  0xa9   : > { %1234 = vmatpush3.bf16.msra.mxu0 %v1902_v38  ;;  %1253 = vmatpush3.bf16.msra.mxu1 %v1902_v38  ;;  %v2115_v55 = vsel %vm606_vm1, %v582_v19, %v2687_v15  ;;  %v364_v0 = vadd.f32 %v1952_v61, %v1929_v53  ;;  %v675_v27 = vmul.f32 %v1971_v11, %v2100_v2  ;;  %v436_v62 = vrot.slane %v295_v41, 1 }
  0xaa   : > { %1236 = vmatprep.subr.bf16.mxu0 %v1918_v48  ;;  %1246 = vmatprep.subr.bf16.mxu1 %v1918_v48  ;;  %v741_v38 = vadd.f32 %v2080_v32, %v719_v54  ;;  %v568_v37 = vadd.f32 %v552_v40, %v532_v31  ;;  %v2126_v24 = vmul.f32 %v1923_v51, %v2056_v5  ;;  %v437_v61 = vrot.slane %v298_v8, 1 }
  0xab   : > { %v711_v19 = vmul.f32 %v2004_v22, %v2115_v55  ;;  %v384_v53 = vmul.f32 %v1915_v46, %v1909_v43  ;;  %v448_v40 = vsel %vm447_vm0, %v425_v36, %v435_v18  ;;  %v2140_v54 = vsel %vm447_vm0, %v426_v47, %v436_v62 }
  0xac   : > { %v757_v15 = vmax.f32 %v741_v38, 0.0  ;;  %v655_v57 = vadd.f32 %v639_v3, %v568_v37  ;;  %v2148_v3 = vsel %vm447_vm0, %v427_v49, %v437_v61  ;;  %v473_v36 = vmul.f32 %v1921_v50, %v448_v40 }
  0xad   : > { %1238 = vmatpush3.bf16.msra.mxu0 %v1918_v48  ;;  %1254 = vmatpush3.bf16.msra.mxu1 %v1918_v48  ;;  %v400_v31 = vadd.f32 %v384_v53, %v364_v0  ;;  %v596_v18 = vrot.slane %v292_v28, 2  ;;  %v509_v47 = vmul.f32 %v1923_v51, %v2140_v54  ;;  %v545_v48 = vmul.f32 %v1963_v4, %v2148_v3  ;;  %v304_v53 = vld [vmem:[%s1875_s8 + $0x70] sm:$0xff] }
  0xae   : > { %1183 = vmatprep.mubr.f32.mxu0 %v757_v15  ;;  %v691_v38 = vadd.f32 %v675_v27, %v655_v57  ;;  %v597_v62 = vrot.slane %v295_v41, 2  ;;  %v598_v37 = vrot.slane %v298_v8, 2  ;;  %v336_v28 = vmul.f32 %v1911_v44, %v1999_v20  ;;  %v307_v27 = vld [vmem:[%s1875_s8 + $0x88] sm:$0xff]  ;;  %v310_v8 = vld [vmem:[%s1875_s8 + $0xa0] sm:$0xff] }
  0xaf   : > { %v489_v0 = vadd.f32 %v473_v36, %v400_v31  ;;  %v607_v49 = vsel %vm606_vm1, %v586_v6, %v596_v18  ;;  %v356_v26 = vmul.f32 %v1913_v45, %v2017_v30  ;;  %v439_v36 = vrot.slane %v304_v53, 1 }
  0xb0   : > { %v727_v15 = vadd.f32 %v711_v19, %v691_v38  ;;  %v2166_v57 = vsel %vm606_vm1, %v587_v7, %v597_v62  ;;  %v632_v41 = vmul.f32 %v1969_v10, %v607_v49  ;;  %v2177_v6 = vsel %vm606_vm1, %v588_v9, %v598_v37 }
  0xb1   : > { %v525_v61 = vadd.f32 %v509_v47, %v489_v0  ;;  %v668_v39 = vmul.f32 %v1971_v11, %v2166_v57  ;;  %v392_v7 = vmul.f32 %v1915_v46, %v2026_v35  ;;  %v704_v40 = vmul.f32 %v2004_v22, %v2177_v6 }
  0xb2   : > { %v749_v19 = vadd.f32 %v2080_v32, %v727_v15  ;;  %v372_v31 = vadd.f32 %v356_v26, %v336_v28  ;;  %v440_v38 = vrot.slane %v307_v27, 1  ;;  %v441_v47 = vrot.slane %v310_v8, 1 }
  0xb3   : > { %v561_v18 = vadd.f32 %v545_v48, %v525_v61  ;;  %v600_v62 = vrot.slane %v304_v53, 2  ;;  %v2190_v37 = vsel %vm447_vm0, %v429_v42, %v439_v36  ;;  %v601_v49 = vrot.slane %v307_v27, 2  ;;  %v2207_v61 = vld [vmem:[%s1875_s8 + $0x48] sm:$0xff] }
  0xb4   : > { %v765_v9 = vmax.f32 %v749_v19, 0.0  ;;  %v408_v0 = vadd.f32 %v392_v7, %v372_v31  ;;  %2735 = vst [vmem:[#allocation24_spill] sm:$0xff] %v2190_v37  ;;  %v2196_v28 = vsel %vm447_vm0, %v430_v52, %v440_v38  ;;  %v2737_v48 = vrot.slane %v2026_v35, 1 }
  0xb5   : > { %v648_v15 = vadd.f32 %v632_v41, %v561_v18  ;;  %2736 = vst [vmem:[#allocation25_spill] sm:$0xff] %v2196_v28  ;;  %v481_v26 = vmul.f32 %v1921_v50, %v2190_v37  ;;  %v2211_v42 = vmul.f32 %v1969_v10, %v2100_v2  ;;  %v517_v52 = vmul.f32 %v1923_v51, %v2196_v28  ;;  %v2274_v37 = vld [vmem:[%s1875_s8 + $0xb0] sm:$0xff] }
  0xb6   : > { %v2202_v53 = vsel %vm447_vm0, %v2737_v48, %v441_v47  ;;  %1195 = vmatprep.mubr.f32.mxu1 %v765_v9  ;;  %v602_v41 = vrot.slane %v310_v8, 2  ;;  %v2738_v27 = vrot.slane %v1999_v20, 2  ;;  %v2740_v18 = vrot.slane %v2017_v30, 2  ;;  %v2244_v48 = vld [vmem:[%s1875_s8 + $0x50] sm:$0xff] }
  0xb7   : > { %v684_v19 = vadd.f32 %v668_v39, %v648_v15  ;;  %v497_v31 = vadd.f32 %v481_v26, %v408_v0  ;;  %v553_v36 = vmul.f32 %v1963_v4, %v2202_v53  ;;  %v2742_v47 = vrot.slane %v2026_v35, 2 }
  0xb8   : > { %v2219_v7 = vsel %vm606_vm1, %v2738_v27, %v600_v62  ;;  %v2227_v38 = vsel %vm606_vm1, %v2740_v18, %v601_v49  ;;  %v349_v39 = vmul.f32 %v1913_v45, %v1896_v34  ;;  %v385_v9 = vmul.f32 %v1915_v46, %v2207_v61 }
  0xb9   : > { %2739 = vst [vmem:[#allocation26_spill] sm:$0xff] %v2219_v7  ;;  %2741 = vst [vmem:[#allocation27_spill] sm:$0xff] %v2227_v38  ;;  %v2233_v8 = vsel %vm606_vm1, %v2742_v47, %v602_v41  ;;  %v640_v62 = vmul.f32 %v1969_v10, %v2219_v7  ;;  %v720_v0 = vadd.f32 %v704_v40, %v684_v19  ;;  %v418_v26 = vrot.slane %v2207_v61, 1  ;;  %v2248_v41 = vld [vmem:[%s1875_s8 + $0xa8] sm:$0xff] }
  0xba   : > { %v533_v15 = vadd.f32 %v517_v52, %v497_v31  ;;  %v676_v49 = vmul.f32 %v1971_v11, %v2227_v38  ;;  %v365_v27 = vadd.f32 %v349_v39, %v1937_v56  ;;  %v428_v18 = vrot.slane %v2244_v48, 1 }
  0xbb   : > { %v579_v47 = vrot.slane %v2207_v61, 2  ;;  %v589_v2 = vrot.slane %v2244_v48, 2  ;;  %v742_v40 = vadd.f32 %v2080_v32, %v720_v0  ;;  %v337_v19 = vmul.f32 %v1911_v44, %v1988_v16 }
  0xbc   : > { %v569_v52 = vadd.f32 %v553_v36, %v533_v15  ;;  %v357_v31 = vmul.f32 %v1913_v45, %v2002_v21  ;;  %v712_v59 = vmul.f32 %v2004_v22, %v2233_v8  ;;  %v401_v56 = vadd.f32 %v385_v9, %v365_v27 }
  0xbd   : > { %v2263_v39 = vsel %vm447_vm0, %v418_v26, %v428_v18  ;;  %v393_v7 = vmul.f32 %v1915_v46, %v2248_v41  ;;  %v758_v0 = vmax.f32 %v742_v40, 0.0  ;;  %v2271_v16 = vsel %vm606_vm1, %v579_v47, %v589_v2 }
  0xbe   : > { %v656_v36 = vadd.f32 %v640_v62, %v569_v52  ;;  %v546_v15 = vmul.f32 %v1963_v4, %v2263_v39  ;;  %v490_v9 = vadd.f32 %v1977_v13, %v401_v56  ;;  %v373_v27 = vadd.f32 %v357_v31, %v337_v19  ;;  %v301_v52 = vld [vmem:[%s1875_s8 + $0x58] sm:$0xff] }
  0xbf   : > { %v422_v26 = vrot.slane %v2248_v41, 1  ;;  %v432_v20 = vrot.slane %v2274_v37, 1  ;;  %1184 = vmatmul.mubr.f32.vlgmr.msra.gmra.mrb[0].mxu0 %v758_v0  ;;  %v583_v62 = vrot.slane %v2248_v41, 2  ;;  %v593_v40 = vrot.slane %v2274_v37, 2 }
  0xc0   : > { %v692_v29 = vadd.f32 %v676_v49, %v656_v36  ;;  %v350_v47 = vmul.f32 %v1913_v45, %v1909_v43  ;;  %v526_v58 = vadd.f32 %v2064_v14, %v490_v9  ;;  %v409_v17 = vadd.f32 %v393_v7, %v373_v27 }
  0xc1   : > { %v2287_v13 = vsel %vm447_vm0, %v422_v26, %v432_v20  ;;  %v386_v19 = vmul.f32 %v1915_v46, %v2244_v48  ;;  %v705_v49 = vmul.f32 %v2004_v22, %v2271_v16  ;;  %v2301_v7 = vsel %vm606_vm1, %v583_v62, %v593_v40 }
  0xc2   : > { %v728_v31 = vadd.f32 %v712_v59, %v692_v29  ;;  %v554_v56 = vmul.f32 %v1963_v4, %v2287_v13  ;;  %v366_v0 = vadd.f32 %v350_v47, %v1948_v60  ;;  %v562_v36 = vadd.f32 %v546_v15, %v526_v58 }
  0xc3   : > { %v498_v14 = vadd.f32 %v2109_v63, %v409_v17  ;;  %v438_v9 = vrot.slane %v301_v52, 1  ;;  %v475_v27 = vmul.f32 %v1921_v50, %v2140_v54  ;;  %v511_v60 = vmul.f32 %v1923_v51, %v2148_v3 }
  0xc4   : > { %v750_v59 = vadd.f32 %v2080_v32, %v728_v31  ;;  %v402_v29 = vadd.f32 %v386_v19, %v366_v0  ;;  %v649_v58 = vadd.f32 %v2073_v25, %v562_v36  ;;  %v599_v15 = vrot.slane %v301_v52, 2  ;;  %v313_v19 = vld [vmem:[%s1875_s8 + $0xb8] sm:$0xff] }
  0xc5   : > { %v534_v17 = vadd.f32 %v2126_v24, %v498_v14  ;;  %v2312_v63 = vsel %vm447_vm0, %v428_v18, %v438_v9  ;;  %v677_v26 = vmul.f32 %v1971_v11, %v2115_v55  ;;  %v713_v24 = vmul.f32 %v2004_v22, %v2301_v7 }
  0xc6   : > { %v766_v62 = vmax.f32 %v750_v59, 0.0  ;;  %v491_v47 = vadd.f32 %v475_v27, %v402_v29  ;;  %v547_v54 = vmul.f32 %v1963_v4, %v2312_v63  ;;  %v685_v31 = vadd.f32 %v2084_v33, %v649_v58 }
  0xc7   : > { %v570_v0 = vadd.f32 %v554_v56, %v534_v17  ;;  %v634_v25 = vmul.f32 %v1969_v10, %v2166_v57  ;;  %v2326_v52 = vsel %vm606_vm1, %v589_v2, %v599_v15  ;;  %v338_v36 = vmul.f32 %v1911_v44, %v2017_v30 }
  0xc8   : > { %1196 = vmatmul.mubr.f32.vlgmr.msra.gmra.mrb[0].mxu1 %v766_v62  ;;  %v527_v18 = vadd.f32 %v511_v60, %v491_v47  ;;  %v358_v14 = vmul.f32 %v1913_v45, %v2026_v35  ;;  %v721_v33 = vadd.f32 %v705_v49, %v685_v31  ;;  %v394_v9 = vmul.f32 %v1915_v46, %v2274_v37 }
  0xc9   : > { %v657_v56 = vadd.f32 %v2211_v42, %v570_v0  ;;  %v442_v59 = vrot.slane %v313_v19, 1  ;;  %v670_v29 = vmul.f32 %v1971_v11, %v2177_v6  ;;  %v483_v2 = vmul.f32 %v1921_v50, %v2196_v28 }
  0xca   : > { %v563_v57 = vadd.f32 %v547_v54, %v527_v18  ;;  %v374_v27 = vadd.f32 %v358_v14, %v338_v36  ;;  %v743_v60 = vadd.f32 %v2080_v32, %v721_v33  ;;  %v603_v42 = vrot.slane %v313_v19, 2 }
  0xcb   : > { %v693_v58 = vadd.f32 %v677_v26, %v657_v56  ;;  %v2342_v49 = vsel %vm447_vm0, %v432_v20, %v442_v59  ;;  %v706_v15 = vmul.f32 %v2004_v22, %v2326_v52  ;;  %v519_v47 = vmul.f32 %v1923_v51, %v2202_v53 }
  0xcc   : > { %v650_v17 = vadd.f32 %v634_v25, %v563_v57  ;;  %v410_v62 = vadd.f32 %v394_v9, %v374_v27  ;;  %v635_v54 = vmul.f32 %v1969_v10, %v2010_v23  ;;  %v484_v31 = vmul.f32 %v1921_v50, %v2056_v5  ;;  %v314_v9 = vld [vmem:[%s1875_s8 + $0xc0] sm:$0xff] }
  0xcd   : > { %v759_v26 = vmax.f32 %v743_v60, 0.0  ;;  %v729_v0 = vadd.f32 %v713_v24, %v693_v58  ;;  %v555_v19 = vmul.f32 %v1963_v4, %v2342_v49  ;;  %v331_v25 = vmul.f32 %v1911_v44, %v1896_v34 }
  0xce   : > { %v686_v20 = vadd.f32 %v670_v29, %v650_v17  ;;  %v499_v18 = vadd.f32 %v483_v2, %v410_v62  ;;  %v2361_v23 = vsel %vm606_vm1, %v593_v40, %v603_v42  ;;  %v351_v5 = vmul.f32 %v1913_v45, %v2207_v61  ;;  %v2384_v17 = vld [vmem:[%s1875_s8 + $0xc8] sm:$0xff] }
  0xcf   : > { %1186 = vmatprep.mubr.f32.mxu0 %v759_v26  ;;  %v751_v36 = vadd.f32 %v2080_v32, %v729_v0  ;;  %v387_v24 = vmul.f32 %v1915_v46, %v1974_v12  ;;  %v643_v14 = vmul.f32 %v1969_v10, %v2115_v55  ;;  %v642_v56 = vmul.f32 %v1969_v10, %v2227_v38 }
  0xd0   : > { %v722_v34 = vadd.f32 %v706_v15, %v686_v20  ;;  %v535_v33 = vadd.f32 %v519_v47, %v499_v18  ;;  %v678_v40 = vmul.f32 %v1971_v11, %v2233_v8  ;;  %v367_v57 = vadd.f32 %v351_v5, %v331_v25  ;;  %v2743_v20 = vld [vmem:[#allocation18_spill] sm:$0xff] }
  0xd1   : > { %v767_v59 = vmax.f32 %v751_v36, 0.0  ;;  %v339_v29 = vmul.f32 %v1911_v44, %v2002_v21  ;;  %v714_v55 = vmul.f32 %v2004_v22, %v2361_v23  ;;  %v359_v60 = vmul.f32 %v1913_v45, %v2248_v41 }
  0xd2   : > { %v744_v27 = vadd.f32 %v2080_v32, %v722_v34  ;;  %v571_v2 = vadd.f32 %v555_v19, %v535_v33  ;;  %v403_v58 = vadd.f32 %v387_v24, %v367_v57  ;;  %v512_v42 = vmul.f32 %v1923_v51, %v2263_v39  ;;  %v2744_v19 = vld [vmem:[#allocation20_spill] sm:$0xff] }
  0xd3   : > { %1198 = vmatprep.mubr.f32.mxu1 %v767_v59  ;;  %v395_v15 = vmul.f32 %v1915_v46, %v314_v9  ;;  %v423_v62 = vrot.slane %v314_v9, 1  ;;  %v375_v26 = vadd.f32 %v359_v60, %v339_v29  ;;  %v433_v0 = vrot.slane %v2384_v17, 1 }
  0xd4   : > { %v760_v21 = vmax.f32 %v744_v27, 0.0  ;;  %v658_v47 = vadd.f32 %v642_v56, %v571_v2  ;;  %v492_v18 = vadd.f32 %v2743_v20, %v403_v58  ;;  %v548_v25 = vmul.f32 %v1963_v4, %v2744_v19 }
  0xd5   : > { %v584_v36 = vrot.slane %v314_v9, 2  ;;  %v594_v5 = vrot.slane %v2384_v17, 2  ;;  %v411_v34 = vadd.f32 %v395_v15, %v375_v26  ;;  %v2394_v33 = vsel %vm447_vm0, %v423_v62, %v433_v0  ;;  %v2745_v15 = vld [vmem:[#allocation22_spill] sm:$0xff] }
  0xd6   : > { %1187 = vmatmul.mubr.f32.gmra.mrb[2].mxu0 %v760_v21  ;;  %v694_v24 = vadd.f32 %v678_v40, %v658_v47  ;;  %v520_v56 = vmul.f32 %v1923_v51, %v2287_v13  ;;  %v528_v59 = vadd.f32 %v512_v42, %v492_v18  ;;  %v671_v57 = vmul.f32 %v1971_v11, %v2271_v16  ;;  %v2746_v47 = vld [vmem:[#allocation19_spill] sm:$0xff]  ;;  %v316_v18 = vld [vmem:[%s1875_s8 + $0xd0] sm:$0xff] }
  0xd7   : > { %v556_v29 = vmul.f32 %v1963_v4, %v2394_v33  ;;  %v332_v27 = vmul.f32 %v1911_v44, %v1909_v43  ;;  %v500_v2 = vadd.f32 %v484_v31, %v411_v34  ;;  %v2406_v60 = vsel %vm606_vm1, %v584_v36, %v594_v5 }
  0xd8   : > { %v730_v40 = vadd.f32 %v714_v55, %v694_v24  ;;  %v352_v58 = vmul.f32 %v1913_v45, %v2244_v48  ;;  %v564_v42 = vadd.f32 %v548_v25, %v528_v59  ;;  %v707_v62 = vmul.f32 %v2004_v22, %v2745_v15 }
  0xd9   : > { %v2413_v21 = vmul.f32 %v1913_v45, %v314_v9  ;;  %v388_v26 = vmul.f32 %v1915_v46, %v2746_v47  ;;  %v536_v31 = vadd.f32 %v520_v56, %v500_v2  ;;  %v477_v20 = vmul.f32 %v1921_v50, %v2148_v3 }
  0xda   : > { %v752_v43 = vadd.f32 %v2080_v32, %v730_v40  ;;  %v368_v55 = vadd.f32 %v352_v58, %v332_v27  ;;  %v651_v36 = vadd.f32 %v635_v54, %v564_v42  ;;  %v679_v25 = vmul.f32 %v1971_v11, %v2301_v7  ;;  %v2747_v42 = vld [vmem:[#allocation24_spill] sm:$0xff] }
  0xdb   : > { %v715_v24 = vmul.f32 %v2004_v22, %v2406_v60  ;;  %v513_v9 = vmul.f32 %v1923_v51, %v2312_v63  ;;  %v572_v59 = vadd.f32 %v556_v29, %v536_v31  ;;  %v340_v56 = vmul.f32 %v1911_v44, %v2026_v35 }
  0xdc   : > { %v768_v34 = vmax.f32 %v752_v43, 0.0  ;;  %v404_v38 = vadd.f32 %v388_v26, %v368_v55  ;;  %v687_v27 = vadd.f32 %v671_v57, %v651_v36  ;;  %v360_v3 = vmul.f32 %v1913_v45, %v2274_v37 }
  0xdd   : > { %v396_v54 = vmul.f32 %v1915_v46, %v2384_v17  ;;  %v443_v40 = vrot.slane %v316_v18, 1  ;;  %v659_v2 = vadd.f32 %v643_v14, %v572_v59  ;;  %v549_v28 = vmul.f32 %v1963_v4, %v2747_v42 }
  0xde   : > { %1199 = vmatmul.mubr.f32.gmra.mrb[2].mxu1 %v768_v34  ;;  %v493_v58 = vadd.f32 %v477_v20, %v404_v38  ;;  %v485_v29 = vmul.f32 %v1921_v50, %v2202_v53  ;;  %v723_v26 = vadd.f32 %v707_v62, %v687_v27  ;;  %v376_v43 = vadd.f32 %v360_v3, %v340_v56  ;;  %v2748_v56 = vld [vmem:[#allocation17_spill] sm:$0xff] }
  0xdf   : > { %v2439_v35 = vsel %vm447_vm0, %v433_v0, %v443_v40  ;;  %v604_v57 = vrot.slane %v316_v18, 2  ;;  %v695_v31 = vadd.f32 %v679_v25, %v659_v2  ;;  %v636_v36 = vmul.f32 %v1969_v10, %v2177_v6  ;;  %v317_v40 = vld [vmem:[%s1875_s8 + $0xd8] sm:$0xff] }
  0xe0   : > { %v529_v55 = vadd.f32 %v513_v9, %v493_v58  ;;  %v672_v38 = vmul.f32 %v1971_v11, %v2326_v52  ;;  %v745_v14 = vadd.f32 %v2080_v32, %v723_v26  ;;  %v412_v20 = vadd.f32 %v396_v54, %v376_v43 }
  0xe1   : > { %v521_v53 = vmul.f32 %v1923_v51, %v2342_v49  ;;  %v557_v0 = vmul.f32 %v1963_v4, %v2439_v35  ;;  %v731_v62 = vadd.f32 %v715_v24, %v695_v31  ;;  %v2452_v25 = vsel %vm606_vm1, %v594_v5, %v604_v57 }
  0xe2   : > { %v565_v18 = vadd.f32 %v549_v28, %v529_v55  ;;  %v333_v6 = vmul.f32 %v1911_v44, %v2207_v61  ;;  %v761_v9 = vmax.f32 %v745_v14, 0.0  ;;  %v501_v34 = vadd.f32 %v485_v29, %v412_v20  ;;  %v2749_v28 = vld [vmem:[#allocation26_spill] sm:$0xff]  ;;  %v2475_v55 = vld [vmem:[%s1875_s8 + $0xe0] sm:$0xff] }
  0xe3   : > { %v353_v59 = vmul.f32 %v1913_v45, %v1974_v12  ;;  %v389_v27 = vmul.f32 %v1915_v46, %v2748_v56  ;;  %v753_v3 = vadd.f32 %v2080_v32, %v731_v62  ;;  %v708_v54 = vmul.f32 %v2004_v22, %v2749_v28 }
  0xe4   : > { %v652_v24 = vadd.f32 %v636_v36, %v565_v18  ;;  %v644_v5 = vmul.f32 %v1969_v10, %v2233_v8  ;;  %1189 = vmatprep.mubr.f32.mxu0 %v761_v9  ;;  %v537_v61 = vadd.f32 %v521_v53, %v501_v34  ;;  %v680_v2 = vmul.f32 %v1971_v11, %v2361_v23 }
  0xe5   : > { %v369_v12 = vadd.f32 %v353_v59, %v333_v6  ;;  %v478_v58 = vmul.f32 %v1921_v50, %v2263_v39  ;;  %v769_v29 = vmax.f32 %v753_v3, 0.0  ;;  %v716_v43 = vmul.f32 %v2004_v22, %v2452_v25  ;;  %v2750_v39 = vld [vmem:[#allocation21_spill] sm:$0xff] }
  0xe6   : > { %v688_v26 = vadd.f32 %v672_v38, %v652_v24  ;;  %v514_v57 = vmul.f32 %v1923_v51, %v2744_v19  ;;  %v573_v31 = vadd.f32 %v557_v0, %v537_v61  ;;  %v341_v36 = vmul.f32 %v1911_v44, %v2248_v41 }
  0xe7   : > { %v405_v8 = vadd.f32 %v389_v27, %v369_v12  ;;  %v397_v14 = vmul.f32 %v1915_v46, %v317_v40  ;;  %1201 = vmatprep.mubr.f32.mxu1 %v769_v29  ;;  %v550_v38 = vmul.f32 %v1963_v4, %v2750_v39  ;;  %v424_v53 = vrot.slane %v317_v40, 1 }
  0xe8   : > { %v724_v20 = vadd.f32 %v708_v54, %v688_v26  ;;  %v434_v62 = vrot.slane %v2475_v55, 1  ;;  %v660_v18 = vadd.f32 %v644_v5, %v573_v31  ;;  %v377_v19 = vadd.f32 %v2413_v21, %v341_v36  ;;  %v319_v31 = vld [vmem:[%s1875_s8 + $0xe8] sm:$0xff]  ;;  %s1471_s8 = scalar_lea.vmem %s2598_s7, 2048 }
  0xe9   : > { %v494_v6 = vadd.f32 %v478_v58, %v405_v8  ;;  %v486_v0 = vmul.f32 %v1921_v50, %v2287_v13  ;;  %v637_v41 = vmul.f32 %v1969_v10, %v2271_v16  ;;  %v673_v34 = vmul.f32 %v1971_v11, %v2745_v15  ;;  %v2751_v58 = vld [vmem:[#allocation23_spill] sm:$0xff]  ;;  %p1472_p4 = scmp.ne.s32.totalorder %s2598_s7, %s1471_s8  ;;  %p1479_p11 = scmp.lt.s32.totalorder %s1477_s13, %s1471_s8 }
  0xea   : > { %v746_v9 = vadd.f32 %v2080_v32, %v724_v20  ;;  %v467_v59 = vsel %vm447_vm0, %v424_v53, %v434_v62  ;;  %v696_v56 = vadd.f32 %v680_v2, %v660_v18  ;;  %v413_v3 = vadd.f32 %v397_v14, %v377_v19 }
  0xeb   : > { %v530_v27 = vadd.f32 %v514_v57, %v494_v6  ;;  %v522_v21 = vmul.f32 %v1923_v51, %v2394_v33  ;;  %v558_v13 = vmul.f32 %v1963_v4, %v467_v59  ;;  %v585_v54 = vrot.slane %v317_v40, 2  ;;  %v2752_v6 = vld [vmem:[#allocation25_spill] sm:$0xff]  ;;  %p1473_p7 = pnand %p1472_p4, %p2756_p3  ;;  %p1480_p0 = por %p1479_p11, %p1478_p9 }
  0xec   : > { %v762_v24 = vmax.f32 %v746_v9, 0.0  ;;  %v595_v5 = vrot.slane %v2475_v55, 2  ;;  %v732_v16 = vadd.f32 %v716_v43, %v696_v56  ;;  %v502_v12 = vadd.f32 %v486_v0, %v413_v3 }
  0xed   : > { %v566_v61 = vadd.f32 %v550_v38, %v530_v27  ;;  %v334_v15 = vmul.f32 %v1911_v44, %v2244_v48  ;;  %v362_v2 = vmul.f32 %v1913_v45, %v2384_v17  ;;  %v709_v33 = vmul.f32 %v2004_v22, %v2751_v58  ;;  %p1474_p13 = pneg %p1473_p7 }
  0xee   : > { %1190 = vmatmul.mubr.f32.gmra.mrb[4].mxu0 %v762_v24  ;;  %v354_v29 = vmul.f32 %v1913_v45, %v2746_v47  ;;  %v390_v40 = vmul.f32 %v1915_v46, %v2017_v30  ;;  %v754_v26 = vadd.f32 %v2080_v32, %v732_v16  ;;  %v538_v57 = vadd.f32 %v522_v21, %v502_v12 }
  0xef   : > { %v653_v43 = vadd.f32 %v637_v41, %v566_v61  ;;  %v645_v48 = vmul.f32 %v1969_v10, %v2301_v7  ;;  %v398_v17 = vmul.f32 %v1915_v46, %v2475_v55  ;;  %v626_v8 = vsel %vm606_vm1, %v585_v54, %v595_v5  ;;  %v2753_v54 = vld [vmem:[#allocation27_spill] sm:$0xff]  ;;  %p1481_p5 = pnand %p1480_p0, %p1474_p13 }
  0xf0   : > { %v370_v36 = vadd.f32 %v354_v29, %v334_v15  ;;  %v479_v45 = vmul.f32 %v1921_v50, %v2312_v63  ;;  %v770_v47 = vmax.f32 %v754_v26, 0.0  ;;  %v574_v14 = vadd.f32 %v558_v13, %v538_v57 }
  0xf1   : > { %v689_v30 = vadd.f32 %v673_v34, %v653_v43  ;;  %v681_v20 = vmul.f32 %v1971_v11, %v2406_v60  ;;  %v515_v7 = vmul.f32 %v1923_v51, %v2747_v42  ;;  %v342_v46 = vmul.f32 %v1911_v44, %v2274_v37 }
  0xf2   : > { %v406_v39 = vadd.f32 %v390_v40, %v370_v36  ;;  %v444_v55 = vrot.slane %v319_v31, 1  ;;  %1202 = vmatmul.mubr.f32.gmra.mrb[4].mxu1 %v770_v47  ;;  %v661_v53 = vadd.f32 %v645_v48, %v574_v14  ;;  %v717_v18 = vmul.f32 %v2004_v22, %v626_v8 }
  0xf3   : > { %v725_v38 = vadd.f32 %v709_v33, %v689_v30  ;;  %v551_v19 = vmul.f32 %v1963_v4, %v2752_v6  ;;  %v378_v0 = vadd.f32 %v362_v2, %v342_v46  ;;  %v487_v60 = vmul.f32 %v1921_v50, %v2342_v49 }
  0xf4   : > { %v495_v63 = vadd.f32 %v479_v45, %v406_v39  ;;  %v697_v42 = vadd.f32 %v681_v20, %v661_v53  ;;  %v457_v44 = vsel %vm447_vm0, %v434_v62, %v444_v55  ;;  %v638_v41 = vmul.f32 %v1969_v10, %v2326_v52 }
  0xf5   : > { %v747_v9 = vadd.f32 %v2080_v32, %v725_v38  ;;  %v414_v34 = vadd.f32 %v398_v17, %v378_v0  ;;  %v523_v59 = vmul.f32 %v1923_v51, %v2439_v35  ;;  %v605_v3 = vrot.slane %v319_v31, 2 }
  0xf6   : > { %v531_v37 = vadd.f32 %v515_v7, %v495_v63  ;;  %v733_v27 = vadd.f32 %v717_v18, %v697_v42  ;;  %v674_v50 = vmul.f32 %v1971_v11, %v2749_v28  ;;  %v559_v24 = vmul.f32 %v1963_v4, %v457_v44 }
  0xf7   : > { %v763_v56 = vmax.f32 %v747_v9, 0.0  ;;  %v503_v49 = vadd.f32 %v487_v60, %v414_v34  ;;  %v710_v52 = vmul.f32 %v2004_v22, %v2753_v54  ;;  %v646_v51 = vmul.f32 %v1969_v10, %v2361_v23 }
  0xf8   : > { %v567_v21 = vadd.f32 %v551_v19, %v531_v37  ;;  %v755_v62 = vadd.f32 %v2080_v32, %v733_v27  ;;  %v616_v61 = vsel %vm606_vm1, %v595_v5, %v605_v3  ;;  %v682_v4 = vmul.f32 %v1971_v11, %v2452_v25  ;;  %v2554_v11 = vld [vmem:[%s2669_s4] ss:$0 sm:$0xff] }
  0xf9   : > { %1192 = vmatprep.mubr.f32.mxu0 %v763_v56  ;;  %v539_v16 = vadd.f32 %v523_v59, %v503_v49  ;;  %v718_v58 = vmul.f32 %v2004_v22, %v616_v61 }
  0xfa   : > { %v654_v13 = vadd.f32 %v638_v41, %v567_v21  ;;  %v771_v35 = vmax.f32 %v755_v62, 0.0 }
  0xfb   : > { %v575_v12 = vadd.f32 %v559_v24, %v539_v16 }
  0xfc   : > { %v690_v28 = vadd.f32 %v674_v50, %v654_v13  ;;  %1204 = vmatprep.mubr.f32.mxu1 %v771_v35 }
  0xfd   : > { %v662_v2 = vadd.f32 %v646_v51, %v575_v12 }
  0xfe   : > { %v726_v15 = vadd.f32 %v710_v52, %v690_v28 }
  0xff   : > { %v698_v29 = vadd.f32 %v682_v4, %v662_v2 }
 0x100   : > { %v748_v33 = vadd.f32 %v2080_v32, %v726_v15 }
 0x101   : > { %v734_v23 = vadd.f32 %v718_v58, %v698_v29 }
 0x102   : > { %v764_v10 = vmax.f32 %v748_v33, 0.0 }
 0x103   : > { %v756_v1 = vadd.f32 %v2080_v32, %v734_v23 }
 0x104   : > { %1193 = vmatmul.mubr.f32.gmra.mrb[6].mxu0 %v764_v10 }
 0x105   : > { %v772_v5 = vmax.f32 %v756_v1, 0.0 }
 0x107   : > { %1205 = vmatmul.mubr.f32.gmra.mrb[6].mxu1 %v772_v5 }
 0x192   : > { %v1185_v25 = vpop.f32.mrb[0].mxu0 }
 0x193   : > { %v868_v22 = vadd.f32 %v1185_v25, %v2554_v11  ;;  %v862_v40 = vpop.f32.mrb[1].mxu0 }
 0x194   : > { %v863_v26 = vadd.f32 %v2554_v11, %v862_v40 }
 0x195   : > { %v942_v43 = vmax.f32 %v868_v22, 0.0 }
 0x196   : > { %v941_v57 = vmax.f32 %v863_v26, 0.0 }
 0x197   : > { %958 = vst [vmem:[%s2560_s12 + $0x8] sm:$0xff] %v942_v43 }
 0x198   : > { %957 = vst [vmem:[%s2560_s12] sm:$0xff] %v941_v57 }
 0x19b   : > { %v1197_v32 = vpop.f32.mrb[0].mxu1 }
 0x19c   : > { %v908_v48 = vadd.f32 %v1197_v32, %v2554_v11  ;;  %v902_v31 = vpop.f32.mrb[1].mxu1 }
 0x19d   : > { %v903_v17 = vadd.f32 %v2554_v11, %v902_v31 }
 0x19e   : > { %v950_v8 = vmax.f32 %v908_v48, 0.0 }
 0x19f   : > { %v949_v36 = vmax.f32 %v903_v17, 0.0 }
 0x1a0   : > { %966 = vst [vmem:[%s2560_s12 + $0x48] sm:$0xff] %v950_v8 }
 0x1a1   : > { %965 = vst [vmem:[%s2560_s12 + $0x40] sm:$0xff] %v949_v36 }
 0x1a9   : > { %v1188_v45 = vpop.f32.mrb[2].mxu0 }
 0x1aa   : > { %v878_v47 = vadd.f32 %v1188_v45, %v2554_v11  ;;  %v872_v30 = vpop.f32.mrb[3].mxu0 }
 0x1ab   : > { %v873_v14 = vadd.f32 %v2554_v11, %v872_v30 }
 0x1ac   : > { %v944_v20 = vmax.f32 %v878_v47, 0.0 }
 0x1ad   : > { %v943_v39 = vmax.f32 %v873_v14, 0.0 }
 0x1ae   : > { %960 = vst [vmem:[%s2560_s12 + $0x18] sm:$0xff] %v944_v20 }
 0x1af   : > { %959 = vst [vmem:[%s2560_s12 + $0x10] sm:$0xff] %v943_v39 }
 0x1b1   : > { %v1200_v7 = vpop.f32.mrb[2].mxu1 }
 0x1b2   : > { %v918_v46 = vadd.f32 %v1200_v7, %v2554_v11  ;;  %v912_v55 = vpop.f32.mrb[3].mxu1 }
 0x1b3   : > { %v913_v38 = vadd.f32 %v2554_v11, %v912_v55 }
 0x1b4   : > { %v952_v53 = vmax.f32 %v918_v46, 0.0 }
 0x1b5   : > { %v951_v18 = vmax.f32 %v913_v38, 0.0 }
 0x1b6   : > { %968 = vst [vmem:[%s2560_s12 + $0x58] sm:$0xff] %v952_v53 }
 0x1b7   : > { %967 = vst [vmem:[%s2560_s12 + $0x50] sm:$0xff] %v951_v18 }
 0x1c1   : > { %v1191_v63 = vpop.f32.mrb[4].mxu0 }
 0x1c2   : > { %v888_v6 = vadd.f32 %v1191_v63, %v2554_v11  ;;  %v882_v19 = vpop.f32.mrb[5].mxu0 }
 0x1c3   : > { %v883_v0 = vadd.f32 %v2554_v11, %v882_v19 }
 0x1c4   : > { %v946_v60 = vmax.f32 %v888_v6, 0.0 }
 0x1c5   : > { %v945_v9 = vmax.f32 %v883_v0, 0.0  ;;  %v1203_v42 = vpop.f32.mrb[4].mxu1 }
 0x1c6   : > { %962 = vst [vmem:[%s2560_s12 + $0x28] sm:$0xff] %v946_v60  ;;  %v928_v44 = vadd.f32 %v1203_v42, %v2554_v11  ;;  %v922_v37 = vpop.f32.mrb[5].mxu1 }
 0x1c7   : > { %961 = vst [vmem:[%s2560_s12 + $0x20] sm:$0xff] %v945_v9  ;;  %v923_v41 = vadd.f32 %v2554_v11, %v922_v37 }
 0x1c8   : > { %v954_v34 = vmax.f32 %v928_v44, 0.0 }
 0x1c9   : > { %v953_v59 = vmax.f32 %v923_v41, 0.0 }
 0x1ca   : > { %970 = vst [vmem:[%s2560_s12 + $0x68] sm:$0xff] %v954_v34 }
 0x1cb   : > { %969 = vst [vmem:[%s2560_s12 + $0x60] sm:$0xff] %v953_v59 }
 0x1d7   : > { %v1194_v56 = vpop.f32.mrb[6].mxu0 }
 0x1d8   : > { %v898_v27 = vadd.f32 %v1194_v56, %v2554_v11  ;;  %v892_v3 = vpop.f32.mrb[7].mxu0 }
 0x1d9   : > { %v893_v21 = vadd.f32 %v2554_v11, %v892_v3 }
 0x1da   : > { %v948_v50 = vmax.f32 %v898_v27, 0.0  ;;  %v1206_v49 = vpop.f32.mrb[6].mxu1 }
 0x1db   : > { %v947_v24 = vmax.f32 %v893_v21, 0.0  ;;  %v938_v62 = vadd.f32 %v1206_v49, %v2554_v11  ;;  %v932_v13 = vpop.f32.mrb[7].mxu1 }
 0x1dc   : > { %964 = vst [vmem:[%s2560_s12 + $0x38] sm:$0xff] %v948_v50  ;;  %v933_v54 = vadd.f32 %v2554_v11, %v932_v13 }
 0x1dd   : > { %963 = vst [vmem:[%s2560_s12 + $0x30] sm:$0xff] %v947_v24  ;;  %v956_v52 = vmax.f32 %v938_v62, 0.0 }
 0x1de   : > { %v955_v16 = vmax.f32 %v933_v54, 0.0 }
 0x1df   : > { %972 = vst [vmem:[%s2560_s12 + $0x78] sm:$0xff] %v956_v52 }
 0x1e0   : > { %971 = vst [vmem:[%s2560_s12 + $0x70] sm:$0xff] %v955_v16 }
 0x1e1   : > { %1484 = shalt.err (!%p1481_p5)
}
 0x1e2   : > { %s1485_s18 = scalar_lea.hbm %s2596_s30, 2048  ;;  %s1489_s12 = scalar_lea.hbm %s2755_s10, 8192 }
 0x1e3   : > { %p1486_p8 = scmp.ne.s32.totalorder %s2596_s30, %s1485_s18  ;;  %p1490_p6 = scmp.lt.u32.totalorder %s2596_s30, %s2755_s10 }
 0x1e4   : > { %p1491_p10 = scmp.lt.u32.totalorder %s1489_s12, %s1485_s18  ;;  %p1493_p4 = scmp.lt.u32.totalorder %s1485_s18, %s2596_s30 }
 0x1e5   : > { %p1487_p12 = pnand %p1486_p8, %p2756_p3 }
 0x1e6   : > { %p1492_p1 = por %p1491_p10, %p1490_p6 }
 0x1e7   : > { %p1488_p2 = pneg %p1487_p12 }
 0x1e8   : > { %p1494_p7 = por %p1493_p4, %p1492_p1 }
 0x1ea   : > { %p1495_p13 = pnand %p1494_p7, %p1488_p2 }
 0x1ec   : > { %1498 = shalt.err (!%p1495_p13)
}
 0x1ed   : > { %s1605_s17 = smov 128   ;;  %s1606_s1 = smov 8  }
 0x1ee   : > { %1268 = dma.vmem_to_hbm [thread:$0]  (%p2756_p3), %s2598_s7, 2048, %s2596_s30, %s2604_s26, %s1605_s17, %s1605_s17, %s1606_s1  }
 0x1ef PF: > { %s2757_s24 = sld [smem:[#allocation12_spill]]  ;;  %s2758_s25 = sld [smem:[#allocation15_spill]] }
 0x1f0   : > { %p1290_p9 = scmp.ge.s32.totalorder %s1597_s28, 2 }
 0x1f5   : > { %s1004_s8 = sand.u32 1, %s2757_s24   ;;  %p2759_p11 = scmp.ne.s32.totalorder %s2758_s25, 0 }
 0x1f6   : > { %s1005_s6 = scalar_lea.sflag [#allocation4], %s1004_s8 }
 0x1f7   : > { %p1282_p0 = pnand %p1290_p9, %p2759_p11 }
 0x1f9   : > { %1552 = dma.done.wait (!%p1282_p0), %s1005_s6, 2048  }
 0x1fa   : > { %1554 = vsyncadd (!%p1282_p0), %s1005_s6, 4294965248  ;;  %s22_s28 = sadd.s32 1, %s1597_s28   ;;  %s2760_s9 = smov %s1813_s21 }
 0x1fb   : > { %p19_p5 = scmp.ge.s32.totalorder %s22_s28, 6   ;;  %s2761_s24 = sld [smem:[#allocation13_spill]] }
 0x1fc   : > { %s2762_s26 = sld [smem:[#allocation16_spill]]  ;;  %s2763_s18 = smov %s1561_s19 }
 0x1fd   : > { %s2764_s19 = smov %s1565_s20  ;;  %s2765_s20 = smov %s1818_s3 }
 0x1fe   : > { %s2766_s21 = smov %s1573_s22  ;;  %s2767_s22 = smov %s1577_s23 }
 0x1ff   : > { %s2768_s23 = smov %s2760_s9  ;;  %s2769_s25 = smov %s1593_s27 }
 0x200   : > { %s2770_s27 = smov %s2776_s14  ;;  %21 = sbr.rel (!%p19_p5) target bundleno = 14 (0xe), region = 94 }
 0x207   :  { %1010 = vsyncpa [#allocation3], 1 }
 0x208   :  { %1012 = vsyncpa [#allocation3 + $0x1], 1 }
 0x209   :  { %1013 = vsyncpa [#allocation6], 1 }
 0x20a   :  { %1014 = vsyncpa [#allocation4], 1 }
 0x20b   :  { %1016 = vsyncpa [#allocation4 + $0x1], 1 }

</bundles_post_ra>
